<compile_context>
chip_gen: v5e
topology: v5e:2x2
jax: 0.10.0
libtpu: 0.0.40
codegen_flags: <defaults>
</compile_context>

<pallas_src>
import functools
import math

import numpy as np
import jax
import jax.numpy as jnp
from jax import lax
from jax.experimental import pallas as pl

EMBED_SIZE = 32
HEADS = 4
SEQ_LEN = 8
BATCH = 2


def _build_constants(batch, heads, seq_len, embed_size):
    """Trace-time constants (numpy) for the fully fused (batch+heads on sublanes) attention.

    Kernel rows are r = n*H*L + h*L + q.  Returns:
      consts  : (3+L, NHL, NHL)
          [0] keep  : (1/sqrt(E)) where same (batch, head) block AND k > q   (entries kept)
          [1] fill  : -1e20/sqrt(E) where NOT keep, else 0                   (masked_fill + scale)
          [2] block : 1.0 where same (batch, head) block                     (per-block softmax)
          [3+d] place_d : 1.0 where same (batch, head) block AND q - c == d  (skew placement)
      block_qe : (NHL, HL)  1.0 where row head == E-column head              (QE block selector)
      cm       : (HL, L)    skew source selector; cm[(h', m), d] = 1 iff m == L-1-d
    """
    N, H, L = batch, heads, seq_len
    HL = H * L
    NHL = N * HL
    inv = 1.0 / math.sqrt(embed_size)

    r = np.arange(NHL)
    rn, rh, rq = r // HL, (r // L) % H, r % L
    same_block = (rn[:, None] == rn[None, :]) & (rh[:, None] == rh[None, :])
    keep = same_block & (rq[None, :] > rq[:, None])          # torch: masked_fill where k <= q
    keep_s = keep.astype(np.float32) * inv                   # scale folded in
    fill_s = np.where(keep, 0.0, -1e20 * inv).astype(np.float32)
    block_s = same_block.astype(np.float32)
    places = [(same_block & ((rq[:, None] - rq[None, :]) == d)).astype(np.float32)
              for d in range(L)]
    consts = np.stack([keep_s, fill_s, block_s] + places, axis=0)      # (3+L, NHL, NHL)

    c = np.arange(HL)
    ch, cm_pos = c // L, c % L
    block_qe = (rh[:, None] == ch[None, :]).astype(np.float32)         # (NHL, HL)
    cm = (cm_pos[:, None] == (L - 1 - np.arange(L))[None, :]).astype(np.float32)  # (HL, L)
    return consts, block_qe, cm


def _attention_kernel(x_ref, wqkv_ref, bqkv_ref, wo_ref, bo_ref, e_ref,
                      bqe_ref, cm_ref, c_ref, o_ref, *, seq_len, embed_size):
    E = embed_size
    L = seq_len
    f32 = jnp.float32

    x = x_ref[...]                                                      # (NHL, E)

    # ---- fused Q|K|V projection: ONE (NHL,E)@(E,3E) MXU push ----
    qkv = jnp.dot(x, wqkv_ref[...], preferred_element_type=f32) + bqkv_ref[...]
    q = qkv[:, 0:E]
    k = qkv[:, E:2 * E]
    v = qkv[:, 2 * E:3 * E]

    keep_s = c_ref[0]                                                   # scale already folded in
    fill_s = c_ref[1]
    block_s = c_ref[2]

    # ---- relative-position term: QE = Q @ E^T (all batches/heads fused), mask + skew ----
    qe = jnp.dot(q, e_ref[...], preferred_element_type=f32) * bqe_ref[...]   # (NHL, HL)
    # vmat[:, d] = qe[(n,h,q), (h, L-1-d)]  -- skew source columns via one small MXU push
    vmat = jnp.dot(qe, cm_ref[...], preferred_element_type=f32)              # (NHL, L)
    # S[(n,h,q),(n,h,c)] = qe[(n,h,q),(h, L-1+c-q)] for c <= q else 0 (== _skew(_mask_positions(QE)))
    s = vmat[:, 0:1] * c_ref[3]                                               # d = 0 term seeds acc
    for d in range(1, L):                                                     # static, unrolled
        s = s + vmat[:, d:d + 1] * c_ref[3 + d]

    # ---- fused scores: one (NHL,E)@(E,NHL) MXU push, mask+scale via precomputed planes ----
    qk = lax.dot_general(q, k, (((1,), (1,)), ((), ())), preferred_element_type=f32)  # (NHL, NHL)
    scaled = qk * keep_s + fill_s
    m = jnp.max(scaled, axis=-1, keepdims=True)
    # `* block_s` is load-bearing: it makes the normalization exactly per-(batch,head) block,
    # including the fully-masked last-query row where every exp() equals 1.
    p = jnp.exp(scaled - m) * block_s
    denom = jnp.sum(p, axis=-1, keepdims=True)
    att = p * pl.reciprocal(denom) + s                                  # exact reciprocal (tiny vector)

    # ---- attention @ V and fc_out: two more single MXU pushes ----
    z = jnp.dot(att, v, preferred_element_type=f32)                     # (NHL, E)
    out = jnp.dot(z, wo_ref[...], preferred_element_type=f32) + bo_ref[...]
    o_ref[...] = out.astype(o_ref.dtype)


def self_attention_forward(x, params, *, heads=HEADS, seq_len=SEQ_LEN):
    """x: (N, seq_len*heads, embed_size) float32 — same layout as the PyTorch module input."""
    wq, bq, wk, bk, wv, bv, e_par, wo, bo = params
    N, LH, emb = x.shape
    H, L = heads, seq_len
    HL = H * L
    NHL = N * HL
    assert LH == L * H

    # ---- layout glue (pure XLA, outside the kernel) ----
    # torch flat row index is q*H + h; kernel rows are r = n*H*L + h*L + q so every per-head
    # matmul fuses and the kernel body has no reshapes.
    x_slab = jnp.transpose(x.reshape(N, L, H, emb), (0, 2, 1, 3)).reshape(NHL, emb)
    # fused projection weight (in, 3*out) and bias row
    w_qkv = jnp.concatenate([wq.T, wk.T, wv.T], axis=1)                 # (E, 3E)
    b_qkv = jnp.concatenate([bq, bk, bv], axis=1)                       # (1, 3E)
    wo_t = wo.T                                                         # (E, E)
    # relative embedding laid out as (E, H*L): e_cat[e, h*L+m] = E[h, m, e]
    e_cat = jnp.transpose(e_par, (2, 0, 1)).reshape(emb, HL)
    # every mask the kernel needs, precomputed at trace time (batch-and-head block-diagonal)
    consts_np, block_qe_np, cm_np = _build_constants(N, H, L, emb)
    consts = jnp.asarray(consts_np)                                     # (3+L, NHL, NHL)
    block_qe = jnp.asarray(block_qe_np)                                 # (NHL, HL)
    cm = jnp.asarray(cm_np)                                             # (HL, L)

    kern = functools.partial(_attention_kernel, seq_len=L, embed_size=emb)
    # No grid: the whole problem is one kernel invocation (batch folded onto sublanes), so all
    # constant inputs are DMA'd exactly once and there is no per-step pipeline overhead.
    out_slab = pl.pallas_call(
        kern,
        out_shape=jax.ShapeDtypeStruct((NHL, emb), jnp.float32),
    )(x_slab, w_qkv, b_qkv, wo_t, bo, e_cat, block_qe, cm, consts)

    # back to torch layout (N, L*H, E) with flat row index q*H + h
    return jnp.transpose(out_slab.reshape(N, H, L, emb), (0, 2, 1, 3)).reshape(N, LH, emb)


def reference_forward(x, params, heads=HEADS, seq_len=SEQ_LEN):
    """Plain-JAX replica of the PyTorch forward (temporal/spatial branch, rel_emb=True)."""
    wq, bq, wk, bk, wv, bv, e_par, wo, bo = params
    N, LH, emb = x.shape
    L = seq_len
    values = x @ wv.T + bv
    keys = x @ wk.T + bk
    queries = x @ wq.T + bq
    values = values.reshape(N, L, heads, emb)
    keys = keys.reshape(N, L, heads, emb)
    queries = queries.reshape(N, L, heads, emb)

    qe = jnp.einsum('nqhe,hme->nhqm', queries, e_par)
    r = jnp.arange(L)[:, None]
    c = jnp.arange(L)[None, :]
    qe = jnp.where((r + c) < (L - 1), 0.0, qe)                 # _mask_positions
    padded = jnp.pad(qe, ((0, 0), (0, 0), (0, 0), (1, 0)))     # _skew
    s = padded.reshape(N, heads, L + 1, L)[:, :, 1:, :]

    qk = jnp.einsum('nqhd,nkhd->nhqk', queries, keys)
    qk = jnp.where(c <= r, -1e20, qk)
    att = jax.nn.softmax(qk / (emb ** 0.5), axis=-1) + s
    z = jnp.einsum('nhql,nlhd->nqhd', att, values).reshape(N, L * heads, emb)
    return z @ wo.T + bo


def make_params(key):
    ks = jax.random.split(key, 9)
    scale = 1.0 / (EMBED_SIZE ** 0.5)
    wq = jax.random.normal(ks[0], (EMBED_SIZE, EMBED_SIZE), jnp.float32) * scale
    bq = jax.random.normal(ks[1], (1, EMBED_SIZE), jnp.float32) * scale
    wk = jax.random.normal(ks[2], (EMBED_SIZE, EMBED_SIZE), jnp.float32) * scale
    bk = jax.random.normal(ks[3], (1, EMBED_SIZE), jnp.float32) * scale
    wv = jax.random.normal(ks[4], (EMBED_SIZE, EMBED_SIZE), jnp.float32) * scale
    bv = jax.random.normal(ks[5], (1, EMBED_SIZE), jnp.float32) * scale
    e_par = jax.random.normal(ks[6], (HEADS, SEQ_LEN, EMBED_SIZE), jnp.float32)  # head_dim == seq_len
    wo = jax.random.normal(ks[7], (EMBED_SIZE, EMBED_SIZE), jnp.float32) * scale
    bo = jax.random.normal(ks[8], (1, EMBED_SIZE), jnp.float32) * scale
    return (wq, bq, wk, bk, wv, bv, e_par, wo, bo)


if __name__ == "__main__":
    root = jax.random.PRNGKey(0)
    kp, kx = jax.random.split(root)
    params = make_params(kp)
    # module input: (N, seq_len*heads, embed_size)
    x = jax.random.normal(kx, (BATCH, SEQ_LEN * HEADS, EMBED_SIZE), jnp.float32)

    out = self_attention_forward(x, params)
    out = jax.block_until_ready(out)

    ref = reference_forward(x, params)
    assert out.shape == (BATCH, SEQ_LEN * HEADS, EMBED_SIZE)
    max_err = float(jnp.max(jnp.abs(out - ref)))
    if max_err > 2e-2:
        raise SystemExit(f"kernel/reference mismatch, max abs err = {max_err}")
    print("KERNEL_OK")
</pallas_src>

<mosaic_0001>
module attributes {stable_mosaic.version = 11 : i64} {
  func.func @_attention_kernel(%arg0: memref<64x32xf32, #tpu.memory_space<vmem>>, %arg1: memref<32x96xf32, #tpu.memory_space<vmem>>, %arg2: memref<1x96xf32, #tpu.memory_space<vmem>>, %arg3: memref<32x32xf32, #tpu.memory_space<vmem>>, %arg4: memref<1x32xf32, #tpu.memory_space<vmem>>, %arg5: memref<32x32xf32, #tpu.memory_space<vmem>>, %arg6: memref<64x32xf32, #tpu.memory_space<vmem>>, %arg7: memref<32x8xf32, #tpu.memory_space<vmem>>, %arg8: memref<11x64x64xf32, #tpu.memory_space<vmem>>, %arg9: memref<64x32xf32, #tpu.memory_space<vmem>>) attributes {dimension_semantics = [], scalar_prefetch = 0 : i64, scratch_operands = 0 : i64, tpu.core_type = #tpu.core_type<tc>} {
    %c0 = arith.constant 0 : index
    %c0_0 = arith.constant 0 : index
    %0 = vector.load %arg0[%c0, %c0_0] : memref<64x32xf32, #tpu.memory_space<vmem>>, vector<64x32xf32>
    %c0_1 = arith.constant 0 : index
    %c0_2 = arith.constant 0 : index
    %1 = vector.load %arg1[%c0_1, %c0_2] : memref<32x96xf32, #tpu.memory_space<vmem>>, vector<32x96xf32>
    %cst = arith.constant dense<0.000000e+00> : vector<64x96xf32>
    %2 = tpu.matmul %0, %1, %cst {dimension_numbers = #tpu.dot_dimension_numbers<[1], [0], [0], [1], [0, 0, 1, 1], [], []>} : vector<64x32xf32>, vector<32x96xf32>, vector<64x96xf32> -> vector<64x96xf32>
    %c0_3 = arith.constant 0 : index
    %c0_4 = arith.constant 0 : index
    %3 = vector.load %arg2[%c0_3, %c0_4] : memref<1x96xf32, #tpu.memory_space<vmem>>, vector<1x96xf32>
    %4 = vector.broadcast %3 : vector<1x96xf32> to vector<64x96xf32>
    %5 = arith.addf %2, %4 : vector<64x96xf32>
    %6 = vector.extract_strided_slice %5 {offsets = [0, 0], sizes = [64, 32], strides = [1, 1]} : vector<64x96xf32> to vector<64x32xf32>
    %7 = vector.extract_strided_slice %5 {offsets = [0, 32], sizes = [64, 32], strides = [1, 1]} : vector<64x96xf32> to vector<64x32xf32>
    %8 = vector.extract_strided_slice %5 {offsets = [0, 64], sizes = [64, 32], strides = [1, 1]} : vector<64x96xf32> to vector<64x32xf32>
    %c0_5 = arith.constant 0 : index
    %c0_6 = arith.constant 0 : index
    %c0_7 = arith.constant 0 : index
    %9 = vector.load %arg8[%c0_5, %c0_6, %c0_7] : memref<11x64x64xf32, #tpu.memory_space<vmem>>, vector<1x64x64xf32>
    %10 = vector.shape_cast %9 : vector<1x64x64xf32> to vector<64x64xf32>
    %c1 = arith.constant 1 : index
    %c0_8 = arith.constant 0 : index
    %c0_9 = arith.constant 0 : index
    %11 = vector.load %arg8[%c1, %c0_8, %c0_9] : memref<11x64x64xf32, #tpu.memory_space<vmem>>, vector<1x64x64xf32>
    %12 = vector.shape_cast %11 : vector<1x64x64xf32> to vector<64x64xf32>
    %c2 = arith.constant 2 : index
    %c0_10 = arith.constant 0 : index
    %c0_11 = arith.constant 0 : index
    %13 = vector.load %arg8[%c2, %c0_10, %c0_11] : memref<11x64x64xf32, #tpu.memory_space<vmem>>, vector<1x64x64xf32>
    %14 = vector.shape_cast %13 : vector<1x64x64xf32> to vector<64x64xf32>
    %c0_12 = arith.constant 0 : index
    %c0_13 = arith.constant 0 : index
    %15 = vector.load %arg5[%c0_12, %c0_13] : memref<32x32xf32, #tpu.memory_space<vmem>>, vector<32x32xf32>
    %cst_14 = arith.constant dense<0.000000e+00> : vector<64x32xf32>
    %16 = tpu.matmul %6, %15, %cst_14 {dimension_numbers = #tpu.dot_dimension_numbers<[1], [0], [0], [1], [0, 0, 1, 1], [], []>} : vector<64x32xf32>, vector<32x32xf32>, vector<64x32xf32> -> vector<64x32xf32>
    %c0_15 = arith.constant 0 : index
    %c0_16 = arith.constant 0 : index
    %17 = vector.load %arg6[%c0_15, %c0_16] : memref<64x32xf32, #tpu.memory_space<vmem>>, vector<64x32xf32>
    %18 = arith.mulf %16, %17 : vector<64x32xf32>
    %c0_17 = arith.constant 0 : index
    %c0_18 = arith.constant 0 : index
    %19 = vector.load %arg7[%c0_17, %c0_18] : memref<32x8xf32, #tpu.memory_space<vmem>>, vector<32x8xf32>
    %cst_19 = arith.constant dense<0.000000e+00> : vector<64x8xf32>
    %20 = tpu.matmul %18, %19, %cst_19 {dimension_numbers = #tpu.dot_dimension_numbers<[1], [0], [0], [1], [0, 0, 1, 1], [], []>} : vector<64x32xf32>, vector<32x8xf32>, vector<64x8xf32> -> vector<64x8xf32>
    %21 = vector.extract_strided_slice %20 {offsets = [0, 0], sizes = [64, 1], strides = [1, 1]} : vector<64x8xf32> to vector<64x1xf32>
    %c3 = arith.constant 3 : index
    %c0_20 = arith.constant 0 : index
    %c0_21 = arith.constant 0 : index
    %22 = vector.load %arg8[%c3, %c0_20, %c0_21] : memref<11x64x64xf32, #tpu.memory_space<vmem>>, vector<1x64x64xf32>
    %23 = vector.shape_cast %22 : vector<1x64x64xf32> to vector<64x64xf32>
    %24 = vector.broadcast %21 : vector<64x1xf32> to vector<64x64xf32>
    %25 = arith.mulf %24, %23 : vector<64x64xf32>
    %26 = vector.extract_strided_slice %20 {offsets = [0, 1], sizes = [64, 1], strides = [1, 1]} : vector<64x8xf32> to vector<64x1xf32>
    %c4 = arith.constant 4 : index
    %c0_22 = arith.constant 0 : index
    %c0_23 = arith.constant 0 : index
    %27 = vector.load %arg8[%c4, %c0_22, %c0_23] : memref<11x64x64xf32, #tpu.memory_space<vmem>>, vector<1x64x64xf32>
    %28 = vector.shape_cast %27 : vector<1x64x64xf32> to vector<64x64xf32>
    %29 = vector.broadcast %26 : vector<64x1xf32> to vector<64x64xf32>
    %30 = arith.mulf %29, %28 : vector<64x64xf32>
    %31 = arith.addf %25, %30 : vector<64x64xf32>
    %32 = vector.extract_strided_slice %20 {offsets = [0, 2], sizes = [64, 1], strides = [1, 1]} : vector<64x8xf32> to vector<64x1xf32>
    %c5 = arith.constant 5 : index
    %c0_24 = arith.constant 0 : index
    %c0_25 = arith.constant 0 : index
    %33 = vector.load %arg8[%c5, %c0_24, %c0_25] : memref<11x64x64xf32, #tpu.memory_space<vmem>>, vector<1x64x64xf32>
    %34 = vector.shape_cast %33 : vector<1x64x64xf32> to vector<64x64xf32>
    %35 = vector.broadcast %32 : vector<64x1xf32> to vector<64x64xf32>
    %36 = arith.mulf %35, %34 : vector<64x64xf32>
    %37 = arith.addf %31, %36 : vector<64x64xf32>
    %38 = vector.extract_strided_slice %20 {offsets = [0, 3], sizes = [64, 1], strides = [1, 1]} : vector<64x8xf32> to vector<64x1xf32>
    %c6 = arith.constant 6 : index
    %c0_26 = arith.constant 0 : index
    %c0_27 = arith.constant 0 : index
    %39 = vector.load %arg8[%c6, %c0_26, %c0_27] : memref<11x64x64xf32, #tpu.memory_space<vmem>>, vector<1x64x64xf32>
    %40 = vector.shape_cast %39 : vector<1x64x64xf32> to vector<64x64xf32>
    %41 = vector.broadcast %38 : vector<64x1xf32> to vector<64x64xf32>
    %42 = arith.mulf %41, %40 : vector<64x64xf32>
    %43 = arith.addf %37, %42 : vector<64x64xf32>
    %44 = vector.extract_strided_slice %20 {offsets = [0, 4], sizes = [64, 1], strides = [1, 1]} : vector<64x8xf32> to vector<64x1xf32>
    %c7 = arith.constant 7 : index
    %c0_28 = arith.constant 0 : index
    %c0_29 = arith.constant 0 : index
    %45 = vector.load %arg8[%c7, %c0_28, %c0_29] : memref<11x64x64xf32, #tpu.memory_space<vmem>>, vector<1x64x64xf32>
    %46 = vector.shape_cast %45 : vector<1x64x64xf32> to vector<64x64xf32>
    %47 = vector.broadcast %44 : vector<64x1xf32> to vector<64x64xf32>
    %48 = arith.mulf %47, %46 : vector<64x64xf32>
    %49 = arith.addf %43, %48 : vector<64x64xf32>
    %50 = vector.extract_strided_slice %20 {offsets = [0, 5], sizes = [64, 1], strides = [1, 1]} : vector<64x8xf32> to vector<64x1xf32>
    %c8 = arith.constant 8 : index
    %c0_30 = arith.constant 0 : index
    %c0_31 = arith.constant 0 : index
    %51 = vector.load %arg8[%c8, %c0_30, %c0_31] : memref<11x64x64xf32, #tpu.memory_space<vmem>>, vector<1x64x64xf32>
    %52 = vector.shape_cast %51 : vector<1x64x64xf32> to vector<64x64xf32>
    %53 = vector.broadcast %50 : vector<64x1xf32> to vector<64x64xf32>
    %54 = arith.mulf %53, %52 : vector<64x64xf32>
    %55 = arith.addf %49, %54 : vector<64x64xf32>
    %56 = vector.extract_strided_slice %20 {offsets = [0, 6], sizes = [64, 1], strides = [1, 1]} : vector<64x8xf32> to vector<64x1xf32>
    %c9 = arith.constant 9 : index
    %c0_32 = arith.constant 0 : index
    %c0_33 = arith.constant 0 : index
    %57 = vector.load %arg8[%c9, %c0_32, %c0_33] : memref<11x64x64xf32, #tpu.memory_space<vmem>>, vector<1x64x64xf32>
    %58 = vector.shape_cast %57 : vector<1x64x64xf32> to vector<64x64xf32>
    %59 = vector.broadcast %56 : vector<64x1xf32> to vector<64x64xf32>
    %60 = arith.mulf %59, %58 : vector<64x64xf32>
    %61 = arith.addf %55, %60 : vector<64x64xf32>
    %62 = vector.extract_strided_slice %20 {offsets = [0, 7], sizes = [64, 1], strides = [1, 1]} : vector<64x8xf32> to vector<64x1xf32>
    %c10 = arith.constant 10 : index
    %c0_34 = arith.constant 0 : index
    %c0_35 = arith.constant 0 : index
    %63 = vector.load %arg8[%c10, %c0_34, %c0_35] : memref<11x64x64xf32, #tpu.memory_space<vmem>>, vector<1x64x64xf32>
    %64 = vector.shape_cast %63 : vector<1x64x64xf32> to vector<64x64xf32>
    %65 = vector.broadcast %62 : vector<64x1xf32> to vector<64x64xf32>
    %66 = arith.mulf %65, %64 : vector<64x64xf32>
    %67 = arith.addf %61, %66 : vector<64x64xf32>
    %cst_36 = arith.constant dense<0.000000e+00> : vector<64x64xf32>
    %68 = tpu.matmul %6, %7, %cst_36 {dimension_numbers = #tpu.dot_dimension_numbers<[1], [1], [0], [0], [0, 0, 1, 0], [], []>} : vector<64x32xf32>, vector<64x32xf32>, vector<64x64xf32> -> vector<64x64xf32>
    %69 = arith.mulf %68, %10 : vector<64x64xf32>
    %70 = arith.addf %69, %12 : vector<64x64xf32>
    %cst_37 = arith.constant dense<0xFF800000> : vector<64xf32>
    %71 = vector.multi_reduction <maximumf>, %70, %cst_37 [1] : vector<64x64xf32> to vector<64xf32>
    %72 = vector.shape_cast %71 : vector<64xf32> to vector<64x1xf32>
    %73 = vector.broadcast %72 : vector<64x1xf32> to vector<64x64xf32>
    %74 = arith.subf %70, %73 : vector<64x64xf32>
    %75 = math.exp %74 : vector<64x64xf32>
    %76 = arith.mulf %75, %14 : vector<64x64xf32>
    %cst_38 = arith.constant dense<0.000000e+00> : vector<64xf32>
    %77 = vector.multi_reduction <add>, %76, %cst_38 [1] : vector<64x64xf32> to vector<64xf32>
    %78 = vector.shape_cast %77 : vector<64xf32> to vector<64x1xf32>
    %79 = tpu.reciprocal %78 : vector<64x1xf32> -> vector<64x1xf32>
    %80 = vector.broadcast %79 : vector<64x1xf32> to vector<64x64xf32>
    %81 = arith.mulf %76, %80 : vector<64x64xf32>
    %82 = arith.addf %81, %67 : vector<64x64xf32>
    %cst_39 = arith.constant dense<0.000000e+00> : vector<64x32xf32>
    %83 = tpu.matmul %82, %8, %cst_39 {dimension_numbers = #tpu.dot_dimension_numbers<[1], [0], [0], [1], [0, 0, 1, 1], [], []>} : vector<64x64xf32>, vector<64x32xf32>, vector<64x32xf32> -> vector<64x32xf32>
    %c0_40 = arith.constant 0 : index
    %c0_41 = arith.constant 0 : index
    %84 = vector.load %arg3[%c0_40, %c0_41] : memref<32x32xf32, #tpu.memory_space<vmem>>, vector<32x32xf32>
    %cst_42 = arith.constant dense<0.000000e+00> : vector<64x32xf32>
    %85 = tpu.matmul %83, %84, %cst_42 {dimension_numbers = #tpu.dot_dimension_numbers<[1], [0], [0], [1], [0, 0, 1, 1], [], []>} : vector<64x32xf32>, vector<32x32xf32>, vector<64x32xf32> -> vector<64x32xf32>
    %c0_43 = arith.constant 0 : index
    %c0_44 = arith.constant 0 : index
    %86 = vector.load %arg4[%c0_43, %c0_44] : memref<1x32xf32, #tpu.memory_space<vmem>>, vector<1x32xf32>
    %87 = vector.broadcast %86 : vector<1x32xf32> to vector<64x32xf32>
    %88 = arith.addf %85, %87 : vector<64x32xf32>
    %c0_45 = arith.constant 0 : index
    %c0_46 = arith.constant 0 : index
    %89 = vector.load %arg9[%c0_45, %c0_46] : memref<64x32xf32, #tpu.memory_space<vmem>>, vector<64x32xf32>
    tpu.vector_store %arg9[%c0_45, %c0_46], %88 {strides = array<i32>} : memref<64x32xf32, #tpu.memory_space<vmem>>, vector<64x32xf32>,
    return
  }
}

</mosaic_0001>

<bundles_post_ra>
// kernel: tpu_custom_call.1
= control target key start
LH: loop header
LB: loop body
LE: loop exit
PB: predicated region body
PF: predicated region fallthrough
CT: control target
= control target key end

     0   :  { %14 = vsyncpa [#allocation3], 0  ;;  %s1459_s12 = smov [#allocation2]   ;;  %s1460_s14 = smov 128   ;;  %s2031_s0 = inlined_call_operand.vmem [shape: f32[64,32], index: 0, kind: input, shape index: {}]   ;;  %s2032_s1 = inlined_call_operand.vmem [shape: f32[32,96], index: 1, kind: input, shape index: {}]   ;;  %s2033_s2 = inlined_call_operand.vmem [shape: f32[1,96], index: 2, kind: input, shape index: {}]   ;;  %s2034_s3 = inlined_call_operand.vmem [shape: f32[32,32], index: 3, kind: input, shape index: {}]   ;;  %s2035_s4 = inlined_call_operand.vmem [shape: f32[1,32], index: 4, kind: input, shape index: {}]   ;;  %s2036_s5 = inlined_call_operand.vmem [shape: f32[32,32], index: 5, kind: input, shape index: {}]   ;;  %s2037_s6 = inlined_call_operand.vmem [shape: f32[64,32], index: 6, kind: input, shape index: {}]   ;;  %s2038_s7 = inlined_call_operand.vmem [shape: f32[32,8], index: 7, kind: input, shape index: {}]   ;;  %s2039_s8 = inlined_call_operand.hbm [shape: f32[11,64,64], index: 8, kind: input, shape index: {}]   ;;  %s2040_s9 = inlined_call_operand.vmem [shape: f32[64,32], index: 9, kind: output, shape index: {}]  }
   0x1   :  { %s35_s11 = sshll.u32 %s2039_s8, 4  ;;  %s37_s13 = sshll.u32 %s1459_s12, 4  ;;  %s36_s11 = int_to_ptr.hbm [resolvable:$true] %s35_s11  ;;  %s38_s13 = int_to_ptr.vmem [resolvable:$true] %s37_s13 }
   0x2   :  { %s1461_s15 = smov 8  }
   0x3   :  { %43 = dma.hbm_to_vmem [thread:$0]  %s36_s11, 11264, %s38_s13, [#allocation3], %s1460_s14, %s1460_s14, %s1461_s15  }
   0x4   :  { %1457 = dma.done.wait [#allocation3], 11264  }
   0x5   :  { %1458 = vsyncadd [#allocation3], 4294956032  ;;  %v59_v0 = vld [vmem:[%s2032_s1 + $0x18] sm:$0xff]  ;;  %v58_v1 = vld [vmem:[%s2032_s1 + $0x10] sm:$0xff]  ;;  %vm64_vm0 = vcmask 261120   ;;  %vm855_vm1 = vcmask 523264  }
   0x6   :  { %101 = vmatpush.msra.mxu0 %v59_v0  ;;  %1295 = vmatpush.msra.mxu3 %v59_v0  ;;  %v57_v2 = vld [vmem:[%s2032_s1 + $0x8] sm:$0xff]  ;;  %v56_v3 = vld [vmem:[%s2032_s1] sm:$0xff]  ;;  %v159_v6 = vld [vmem:[%s2036_s5 + $0x18] sm:$0xff] }
   0x7   :  { %v48_v4 = vld [vmem:[%s2031_s0] sm:$0xff]  ;;  %v53_v5 = vld [vmem:[%s2031_s0 + $0x28] sm:$0xff]  ;;  %v158_v7 = vld [vmem:[%s2036_s5 + $0x10] sm:$0xff]  ;;  %196 = vmatpush.msra.mxu1 %v159_v6  ;;  %1299 = vmatpush.msra.mxu2 %v159_v6 }
   0x8   :  { %102 = vmatpush.msra.mxu0 %v58_v1  ;;  %1296 = vmatpush.msra.mxu3 %v58_v1  ;;  %v49_v8 = vld [vmem:[%s2031_s0 + $0x8] sm:$0xff]  ;;  %v54_v9 = vld [vmem:[%s2031_s0 + $0x30] sm:$0xff]  ;;  %v55_v11 = vld [vmem:[%s2031_s0 + $0x38] sm:$0xff] }
   0x9   :  { %197 = vmatpush.msra.mxu1 %v158_v7  ;;  %1300 = vmatpush.msra.mxu2 %v158_v7  ;;  %v50_v10 = vld [vmem:[%s2031_s0 + $0x10] sm:$0xff]  ;;  %v51_v12 = vld [vmem:[%s2031_s0 + $0x18] sm:$0xff]  ;;  %v52_v13 = vld [vmem:[%s2031_s0 + $0x20] sm:$0xff]  ;;  %s1462_s0 = smov 96  }
   0xa   :  { %103 = vmatpush.msra.mxu0 %v57_v2  ;;  %1297 = vmatpush.msra.mxu3 %v57_v2  ;;  %v157_v14 = vld [vmem:[%s2036_s5 + $0x8] sm:$0xff]  ;;  %v156_v15 = vld [vmem:[%s2036_s5] sm:$0xff]  ;;  %v244_v37 = vld [vmem:[%s2038_s7 + $0x18] sm:$0xff] }
   0xb   :  { %198 = vmatpush.msra.mxu1 %v157_v14  ;;  %1301 = vmatpush.msra.mxu2 %v157_v14  ;;  %v1399_v16 = vld [vmem:[%s2033_s2] ss:$0 sm:$0xff]  ;;  %s1463_s2 = smov 64   ;;  %v243_v38 = vld [vmem:[%s2038_s7 + $0x10] sm:$0xff]  ;;  %v242_v39 = vld [vmem:[%s2038_s7 + $0x8] sm:$0xff] }
   0xc   :  { %104 = vmatpush.msra.mxu0 %v56_v3  ;;  %1298 = vmatpush.msra.mxu3 %v56_v3  ;;  %v241_v40 = vld [vmem:[%s2038_s7] sm:$0xff]  ;;  %v226_v53 = vld [vmem:[%s2037_s6 + $0x8] sm:$0xff]  ;;  %v227_v58 = vld [vmem:[%s2037_s6 + $0x10] sm:$0xff] }
   0xd   :  { %1239 = vmatmul.msk.f32.vlgmr.msra.gmra.mxu0 %vm64_vm0, %v48_v4  ;;  %1244 = vmatmul.msk.f32.vlgmr.msra.gmra.mxu3 %vm64_vm0, %v53_v5  ;;  %v225_v47 = vld [vmem:[%s2037_s6] sm:$0xff]  ;;  %v228_v62 = vld [vmem:[%s2037_s6 + $0x18] sm:$0xff] }
   0xe   :  { %199 = vmatpush.msra.mxu1 %v156_v15  ;;  %1302 = vmatpush.msra.mxu2 %v156_v15  ;;  %v229_v3 = vld [vmem:[%s2037_s6 + $0x20] sm:$0xff] }
  0x10   :  { %281 = vmatpush.msrb.mxu2 %v244_v37 }
  0x12   :  { %282 = vmatpush.msrb.mxu2 %v243_v38 }
  0x14   :  { %283 = vmatpush.msrb.mxu2 %v242_v39 }
  0x15   :  { %1240 = vmatmul.msk.f32.gmra.mxu0 %vm64_vm0, %v49_v8  ;;  %1245 = vmatmul.msk.f32.gmra.mxu3 %vm64_vm0, %v54_v9 }
  0x16   :  { %284 = vmatpush.msrb.mxu2 %v241_v40  ;;  %v311_v40 = vld [vmem:[#allocation2 + $0xc0] sm:$0xff] }
  0x1d   :  { %1241 = vmatmul.msk.f32.gmra.mxu0 %vm64_vm0, %v50_v10  ;;  %1246 = vmatmul.msk.f32.gmra.mxu3 %vm64_vm0, %v55_v11  ;;  %v230_v10 = vld [vmem:[%s2037_s6 + $0x28] sm:$0xff] }
  0x25   :  { %1242 = vmatmul.msk.f32.gmra.mxu0 %vm64_vm0, %v51_v12 }
  0x2d   :  { %1243 = vmatmul.msk.f32.gmra.mxu0 %vm64_vm0, %v52_v13 }
  0x8a   :  { %v106_v17 = vpop.f32.mrf.mxu0 }
  0x8b   :  { %v1584_v18 = vadd.f32 %v1399_v16, %v106_v17 }
  0x8d   :  { %766 = vrot.lane.b32.xlu1 %v1584_v18, %s1462_s0  ;;  %1247 = vmatmul.msk.f32.vlgmr.msra.gmra.mxu1 %vm64_vm0, %v1584_v18 }
  0x90   :  { %v121_v19 = vpop.f32.mrf.mxu3 }
  0x91   :  { %v1590_v20 = vadd.f32 %v1399_v16, %v121_v19 }
  0x92   :  { %v109_v21 = vpop.f32.mrf.mxu0 }
  0x93   :  { %v1592_v22 = vadd.f32 %v1399_v16, %v109_v21  ;;  %1252 = vmatmul.msk.f32.vlgmr.msra.gmra.mxu2 %vm64_vm0, %v1590_v20  ;;  %v232_v21 = vld [vmem:[%s2037_s6 + $0x38] sm:$0xff] }
  0x95   :  { %768 = vrot.lane.b32.xlu0 %v1592_v22, %s1462_s0  ;;  %v1316_v23 = vpack.i.bf16 %v1584_v18, %v1592_v22  ;;  %776 = vrot.lane.b32.xlu1 %v1590_v20, %s1462_s0 }
  0x96   :  { %1248 = vmatmul.msk.f32.gmra.mxu1 %vm64_vm0, %v1592_v22 }
  0x97   :  { %1317 = vrot.lane.b32.xlu2 %v1316_v23, %s1463_s2 }
  0x98   :  { %v124_v24 = vpop.f32.mrf.mxu3 }
  0x99   :  { %v1604_v25 = vadd.f32 %v1399_v16, %v124_v24  ;;  %v1465_v24 = vmov 2  }
  0x9a   :  { %v112_v26 = vpop.f32.mrf.mxu0  ;;  %1338 = vset.pattern.permute.xlu1 %v1465_v24 }
  0x9b   :  { %1253 = vmatmul.msk.f32.gmra.mxu2 %vm64_vm0, %v1604_v25  ;;  %v1608_v27 = vadd.f32 %v1399_v16, %v112_v26 }
  0x9d   :  { %778 = vrot.lane.b32.xlu0 %v1604_v25, %s1462_s0 }
  0x9e   :  { %1249 = vmatmul.msk.f32.gmra.mxu1 %vm64_vm0, %v1608_v27 }
  0x9f   :  { %770 = vrot.lane.b32.xlu2 %v1608_v27, %s1462_s0 }
  0xa0   :  { %v127_v28 = vpop.f32.mrf.mxu3 }
  0xa1   :  { %v1616_v29 = vadd.f32 %v1399_v16, %v127_v28  ;;  %v1468_v28 = vmov 4  }
  0xa2   :  { %v115_v30 = vpop.f32.mrf.mxu0 }
  0xa3   :  { %v1618_v31 = vadd.f32 %v1399_v16, %v115_v30  ;;  %v1321_v32 = vpack.i.bf16 %v1604_v25, %v1616_v29  ;;  %1254 = vmatmul.msk.f32.gmra.mxu2 %vm64_vm0, %v1616_v29  ;;  %v1469_v30 = vmov 1  }
  0xa5   :  { %780 = vrot.lane.b32.xlu0 %v1616_v29, %s1462_s0  ;;  %v1326_v33 = vpack.i.bf16 %v1608_v27, %v1618_v31 }
  0xa6   :  { %1250 = vmatmul.msk.f32.gmra.mxu1 %vm64_vm0, %v1618_v31 }
  0xa7   :  { %1327 = vrot.lane.b32.xlu1 %v1326_v33, %s1463_s2  ;;  %1322 = vrot.lane.b32.xlu2 %v1321_v32, %s1463_s2 }
  0xaa   :  { %v118_v34 = vpop.f32.mrf.mxu0 }
  0xab   :  { %v1630_v35 = vadd.f32 %v1399_v16, %v118_v34  ;;  %v231_v16 = vld [vmem:[%s2037_s6 + $0x30] sm:$0xff] }
  0xad   :  { %v1331_v36 = vpack.i.bf16 %v1630_v35, %v1590_v20 }
  0xae   :  { %1251 = vmatmul.msk.f32.gmra.mxu1 %vm64_vm0, %v1630_v35 }
  0xaf   :  { %774 = vrot.lane.b32.xlu1 %v1630_v35, %s1462_s0  ;;  %772 = vrot.lane.b32.xlu2 %v1618_v31, %s1462_s0 }
  0xb7   :  { %1332 = vrot.lane.b32.xlu1 %v1331_v36, %s1463_s2 }
  0xf1   :  { %v1318_v41 = vpop.permute.xlu2 %1317 }
  0xf2   :  { %v1319_v12 = vunpack.i.l.bf16 %v1318_v41  ;;  %v1320_v14 = vunpack.i.h.bf16 %v1318_v41  ;;  %v368_v41 = vld [vmem:[#allocation2 + $0x100] sm:$0xff] }
  0xf9   :  { %v771_v42 = vpop.permute.xlu2 %770 }
  0xff   :  { %v767_v45 = vpop.permute.xlu1 %766 }
 0x101   :  { %v1323_v43 = vpop.permute.xlu2 %1322 }
 0x102   :  { %v1324_v44 = vunpack.i.l.bf16 %v1323_v43  ;;  %v1325_v48 = vunpack.i.h.bf16 %v1323_v43 }
 0x104   :  { %1120 = vmatpush.msrb.mxu0 %v1324_v44 }
 0x106   :  { %1121 = vmatpush.msrb.mxu0 %v1325_v48 }
 0x107   :  { %v769_v46 = vpop.permute.xlu0 %768  ;;  %v777_v52 = vpop.permute.xlu1 %776 }
 0x109   :  { %v773_v1 = vpop.permute.xlu2 %772 }
 0x10a   :  { %v201_v49 = vpop.f32.mrf.mxu1 }
 0x10b   :  { %v233_v50 = vmul.f32 %v225_v47, %v201_v49  ;;  %v425_v49 = vld [vmem:[#allocation2 + $0x140] sm:$0xff] }
 0x10d   :  { %1255 = vmatmul.msk.f32.vlgmr.msrb.gmra.mxu2 %vm64_vm0, %v233_v50  ;;  %v482_v50 = vld [vmem:[#allocation2 + $0x180] sm:$0xff] }
 0x10f   :  { %v779_v51 = vpop.permute.xlu0 %778 }
 0x113   :  { %v204_v54 = vpop.f32.mrf.mxu1 }
 0x114   :  { %v234_v55 = vmul.f32 %v226_v53, %v204_v54 }
 0x116   :  { %1256 = vmatmul.msk.f32.gmra.mxu2 %vm64_vm0, %v234_v55  ;;  %v216_v9 = vpop.f32.mrf.mxu2 }
 0x117   :  { %v781_v56 = vpop.permute.xlu0 %780  ;;  %v238_v13 = vmul.f32 %v230_v10, %v216_v9 }
 0x118   :  { %1263 = vmatpush.xpose.msk.msrb.mxu3 %vm64_vm0, %v781_v56 }
 0x119   :  { %v1328_v57 = vpop.permute.xlu1 %1327 }
 0x11a   :  { %v1329_v7 = vunpack.i.l.bf16 %v1328_v57  ;;  %v1330_v11 = vunpack.i.h.bf16 %v1328_v57 }
 0x11b   :  { %v207_v59 = vpop.f32.mrf.mxu1 }
 0x11c   :  { %1264 = vmatpush.xpose.msk.msrb.mxu3 %vm64_vm0, %v779_v51  ;;  %v235_v60 = vmul.f32 %v227_v58, %v207_v59  ;;  %v132_v59 = vld [vmem:[#allocation2 + $0x10] sm:$0xff] }
 0x11e   :  { %1257 = vmatmul.msk.f32.gmra.mxu2 %vm64_vm0, %v235_v60  ;;  %v219_v15 = vpop.f32.mrf.mxu2  ;;  %v539_v60 = vld [vmem:[#allocation2 + $0x1c0] sm:$0xff] }
 0x11f   :  { %v239_v17 = vmul.f32 %v231_v16, %v219_v15 }
 0x120   :  { %1265 = vmatpush.xpose.msk.msrb.mxu3 %vm64_vm0, %v777_v52 }
 0x121   :  { %v775_v61 = vpop.permute.xlu1 %774 }
 0x123   :  { %v210_v63 = vpop.f32.mrf.mxu1 }
 0x124   :  { %1266 = vmatpush.xpose.msk.msrb.mxu3 %vm64_vm0, %v775_v61  ;;  %v236_v0 = vmul.f32 %v228_v62, %v210_v63  ;;  %v596_v62 = vld [vmem:[#allocation2 + $0x200] sm:$0xff] }
 0x126   :  { %1258 = vmatmul.msk.f32.gmra.mxu2 %vm64_vm0, %v236_v0  ;;  %v222_v19 = vpop.f32.mrf.mxu2 }
 0x127   :  { %v240_v23 = vmul.f32 %v232_v21, %v222_v19 }
 0x128   :  { %1267 = vmatpush.xpose.msk.msrb.mxu3 %vm64_vm0, %v773_v1 }
 0x129   :  { %v1333_v2 = vpop.permute.xlu1 %1332 }
 0x12a   :  { %v1334_v4 = vunpack.i.l.bf16 %v1333_v2  ;;  %v1335_v5 = vunpack.i.h.bf16 %v1333_v2  ;;  %v141_v2 = vld [vmem:[#allocation2 + $0x50] sm:$0xff] }
 0x12b   :  { %v213_v6 = vpop.f32.mrf.mxu1 }
 0x12c   :  { %1268 = vmatpush.xpose.msk.msrb.mxu3 %vm64_vm0, %v771_v42  ;;  %1122 = vmatpush.msrb.mxu0 %v1334_v4  ;;  %v237_v8 = vmul.f32 %v229_v3, %v213_v6  ;;  %v653_v3 = vld [vmem:[#allocation2 + $0x240] sm:$0xff] }
 0x12e   :  { %1123 = vmatpush.msrb.mxu0 %v1335_v5  ;;  %1259 = vmatmul.msk.f32.gmra.mxu2 %vm64_vm0, %v237_v8  ;;  %v135_v8 = vld [vmem:[#allocation2 + $0x28] sm:$0xff] }
 0x130   :  { %1269 = vmatpush.xpose.msk.msrb.mxu3 %vm64_vm0, %v769_v46  ;;  %1124 = vmatpush.msrb.mxu0 %v1329_v7 }
 0x132   :  { %1125 = vmatpush.msrb.mxu0 %v1330_v11 }
 0x134   :  { %1270 = vmatpush.xpose.msk.msrb.mxu3 %vm64_vm0, %v767_v45  ;;  %1126 = vmatpush.msrb.mxu0 %v1319_v12  ;;  %v710_v12 = vld [vmem:[#allocation2 + $0x280] sm:$0xff] }
 0x136   :  { %1127 = vmatpush.msrb.mxu0 %v1320_v14  ;;  %1260 = vmatmul.msk.f32.gmra.mxu2 %vm64_vm0, %v238_v13 }
 0x137   :  { %1271 = vmatmul.msk.f32.vlgmr.msrb.gmra.mxu3 %vm64_vm0, %v1584_v18  ;;  %v1464_v18 = vmov 3  }
 0x138   :  { %1339 = vset.pattern.permute.xlu0 %v1464_v18 }
 0x13e   :  { %1261 = vmatmul.msk.f32.gmra.mxu2 %vm64_vm0, %v239_v17  ;;  %v144_v17 = vld [vmem:[#allocation2 + $0x68] sm:$0xff] }
 0x13f   :  { %1272 = vmatmul.msk.f32.gmra.mxu3 %vm64_vm0, %v1592_v22  ;;  %v1466_v22 = vmov 0  }
 0x140   :  { %1336 = vset.pattern.permute.xlu2 %v1466_v22 }
 0x146   :  { %1262 = vmatmul.msk.f32.gmra.mxu2 %vm64_vm0, %v240_v23 }
 0x147   :  { %1273 = vmatmul.msk.f32.gmra.mxu3 %vm64_vm0, %v1608_v27  ;;  %v1467_v27 = vmov 5  }
 0x14f   :  { %1274 = vmatmul.msk.f32.gmra.mxu3 %vm64_vm0, %v1618_v31 }
 0x157   :  { %1275 = vmatmul.msk.f32.gmra.mxu3 %vm64_vm0, %v1630_v35 }
 0x15f   :  { %1276 = vmatmul.msk.f32.gmra.mxu3 %vm64_vm0, %v1590_v20 }
 0x167   :  { %1277 = vmatmul.msk.f32.gmra.mxu3 %vm64_vm0, %v1604_v25  ;;  %v1470_v25 = vmov 7  }
 0x16f   :  { %1278 = vmatmul.msk.f32.gmra.mxu3 %vm64_vm0, %v1616_v29  ;;  %v1471_v29 = vmov 6  }
 0x190   :  { %v286_v26 = vpop.f32.mrf.mxu2 }
 0x191   :  { %491 = vperm.xlu0 %1339, %v286_v26   ;;  %434 = vperm.xlu1 %1338, %v286_v26  }
 0x192   :  { %321 = vperm.xlu2 %1336, %v286_v26  }
 0x199   :  { %1341 = vset.pattern.permute.xlu0 %v1467_v27  ;;  %1340 = vset.pattern.permute.xlu1 %v1468_v28  ;;  %v289_v20 = vpop.f32.mrf.mxu2 }
 0x19a   :  { %1337 = vset.pattern.permute.xlu2 %v1469_v30  ;;  %605 = vperm.xlu0 %1341, %v286_v26  }
 0x19b   :  { %548 = vperm.xlu1 %1340, %v286_v26   ;;  %377 = vperm.xlu2 %1337, %v286_v26  }
 0x1a1   :  { %v292_v31 = vpop.f32.mrf.mxu2 }
 0x1a2   :  { %1344 = vset.pattern.permute.xlu0 %v1466_v22 }
 0x1a3   :  { %1343 = vset.pattern.permute.xlu1 %v1470_v25  ;;  %1342 = vset.pattern.permute.xlu2 %v1471_v29 }
 0x1a4   :  { %719 = vperm.xlu1 %1343, %v286_v26   ;;  %662 = vperm.xlu2 %1342, %v286_v26  }
 0x1a5   :  { %326 = vperm.xlu0 %1344, %v289_v20  }
 0x1a9   :  { %v1725_v32 = vpop.f32.mrf.mxu2 }
 0x1ac   :  { %1345 = vset.pattern.permute.xlu1 %v1469_v30  ;;  %666 = vperm.xlu2 %1342, %v289_v20  }
 0x1ad   :  { %1347 = vset.pattern.permute.xlu0 %v1464_v18  ;;  %381 = vperm.xlu1 %1345, %v289_v20  }
 0x1ae   :  { %495 = vperm.xlu0 %1347, %v289_v20  }
 0x1b1   :  { %v1731_v33 = vpop.f32.mrf.mxu2 }
 0x1b4   :  { %1350 = vset.pattern.permute.xlu2 %v1470_v25 }
 0x1b5   :  { %723 = vperm.xlu2 %1350, %v289_v20   ;;  %1346 = vset.pattern.permute.xlu1 %v1465_v24 }
 0x1b6   :  { %1348 = vset.pattern.permute.xlu0 %v1468_v28  ;;  %438 = vperm.xlu1 %1346, %v289_v20  }
 0x1b7   :  { %552 = vperm.xlu0 %1348, %v289_v20  }
 0x1b9   :  { %v1737_v34 = vpop.f32.mrf.mxu2 }
 0x1ba   :  { %v1746_v36 = vpop.f32.mrf.mxu3 }
 0x1bd   :  { %1352 = vset.pattern.permute.xlu2 %v1469_v30 }
 0x1be   :  { %1351 = vset.pattern.permute.xlu1 %v1466_v22  ;;  %385 = vperm.xlu2 %1352, %v292_v31  }
 0x1bf   :  { %1349 = vset.pattern.permute.xlu0 %v1467_v27  ;;  %331 = vperm.xlu1 %1351, %v292_v31  }
 0x1c0   :  { %609 = vperm.xlu0 %1349, %v289_v20  }
 0x1c1   :  { %v1744_v35 = vpop.f32.mrf.mxu2 }
 0x1c2   :  { %v1755_v38 = vpop.f32.mrf.mxu3 }
 0x1c6   :  { %1353 = vset.pattern.permute.xlu2 %v1465_v24 }
 0x1c7   :  { %442 = vperm.xlu2 %1353, %v292_v31   ;;  %1360 = vset.pattern.permute.xlu1 %v1469_v30 }
 0x1c8   :  { %1354 = vset.pattern.permute.xlu0 %v1464_v18  ;;  %389 = vperm.xlu1 %1360, %v1725_v32  }
 0x1c9   :  { %499 = vperm.xlu0 %1354, %v292_v31   ;;  %v1753_v37 = vpop.f32.mrf.mxu2 }
 0x1ca   :  { %v821_v42 = vpop.f32.mrf.mxu3 }
 0x1cb   :  { %v841_v61 = vmul.f32 %v821_v42, %v132_v59 }
 0x1cd   :  { %v1788_v7 = vadd.f32 %v841_v61, %v141_v2  ;;  %v654_v2 = vld [vmem:[#allocation2 + $0x248] sm:$0xff] }
 0x1cf   :  { %1355 = vset.pattern.permute.xlu2 %v1468_v28  ;;  %v862_v15 = vsel %vm855_vm1, %v1788_v7, -inf }
 0x1d0   :  { %556 = vperm.xlu2 %1355, %v292_v31   ;;  %1367 = vset.pattern.permute.xlu1 %v1466_v22 }
 0x1d1   :  { %1356 = vset.pattern.permute.xlu0 %v1467_v27  ;;  %341 = vperm.xlu1 %1367, %v1731_v33  }
 0x1d2   :  { %613 = vperm.xlu0 %1356, %v292_v31   ;;  %v1770_v47 = vpop.f32.mrf.mxu3 }
 0x1d8   :  { %1357 = vset.pattern.permute.xlu2 %v1471_v29 }
 0x1d9   :  { %670 = vperm.xlu2 %1357, %v292_v31   ;;  %1372 = vset.pattern.permute.xlu1 %v1467_v27 }
 0x1da   :  { %1362 = vset.pattern.permute.xlu0 %v1464_v18  ;;  %621 = vperm.xlu1 %1372, %v1731_v33   ;;  %v1779_v57 = vpop.f32.mrf.mxu3 }
 0x1db   :  { %503 = vperm.xlu0 %1362, %v1725_v32  }
 0x1e1   :  { %1358 = vset.pattern.permute.xlu2 %v1470_v25 }
 0x1e2   :  { %727 = vperm.xlu2 %1358, %v292_v31   ;;  %1386 = vset.pattern.permute.xlu1 %v1468_v28  ;;  %v830_v9 = vpop.f32.mrf.mxu3  ;;  %v312_v31 = vld [vmem:[#allocation2 + $0xc8] sm:$0xff] }
 0x1e3   :  { %1365 = vset.pattern.permute.xlu0 %v1471_v29  ;;  %572 = vperm.xlu1 %1386, %v1744_v35   ;;  %v844_v14 = vmul.f32 %v830_v9, %v135_v8 }
 0x1e4   :  { %674 = vperm.xlu0 %1365, %v1725_v32  }
 0x1e5   :  { %v1797_v20 = vadd.f32 %v844_v14, %v144_v17  ;;  %v131_v17 = vld [vmem:[#allocation2 + $0x8] sm:$0xff] }
 0x1ea   :  { %1359 = vset.pattern.permute.xlu2 %v1466_v22 }
 0x1eb   :  { %336 = vperm.xlu2 %1359, %v1725_v32   ;;  %1387 = vset.pattern.permute.xlu1 %v1466_v22 }
 0x1ec   :  { %1368 = vset.pattern.permute.xlu0 %v1469_v30  ;;  %v322_v39 = vpop.permute.xlu2 %321  ;;  %356 = vperm.xlu1 %1387, %v1753_v37  }
 0x1ed   :  { %393 = vperm.xlu0 %1368, %v1731_v33   ;;  %v359_v44 = vmul.f32 %v322_v39, %v311_v40  ;;  %v369_v39 = vld [vmem:[#allocation2 + $0x108] sm:$0xff] }
 0x1f3   :  { %1361 = vset.pattern.permute.xlu2 %v1465_v24 }
 0x1f4   :  { %446 = vperm.xlu2 %1361, %v1725_v32   ;;  %1391 = vset.pattern.permute.xlu1 %v1465_v24 }
 0x1f5   :  { %1371 = vset.pattern.permute.xlu0 %v1468_v28  ;;  %v378_v43 = vpop.permute.xlu2 %377 }
 0x1f6   :  { %v408_v45 = vmul.f32 %v378_v43, %v368_v41  ;;  %564 = vperm.xlu0 %1371, %v1731_v33  }
 0x1f8   :  { %v416_v46 = vadd.f32 %v408_v45, %v359_v44 }
 0x1fc   :  { %1363 = vset.pattern.permute.xlu2 %v1468_v28 }
 0x1fd   :  { %560 = vperm.xlu2 %1363, %v1725_v32  }
 0x1fe   :  { %1373 = vset.pattern.permute.xlu0 %v1471_v29  ;;  %v663_v48 = vpop.permute.xlu2 %662 }
 0x1ff   :  { %678 = vperm.xlu0 %1373, %v1731_v33   ;;  %v693_v10 = vmul.f32 %v663_v48, %v653_v3  ;;  %v483_v48 = vld [vmem:[#allocation2 + $0x188] sm:$0xff] }
 0x203   :  { %v492_v51 = vpop.permute.xlu0 %491  ;;  %v435_v52 = vpop.permute.xlu1 %434 }
 0x204   :  { %v465_v53 = vmul.f32 %v435_v52, %v425_v49  ;;  %v522_v54 = vmul.f32 %v492_v51, %v482_v50  ;;  %v540_v52 = vld [vmem:[#allocation2 + $0x1c8] sm:$0xff] }
 0x205   :  { %1364 = vset.pattern.permute.xlu2 %v1467_v27 }
 0x206   :  { %v473_v55 = vadd.f32 %v465_v53, %v416_v46  ;;  %v1775_v56 = vpop.permute.xlu2 %666  ;;  %617 = vperm.xlu2 %1364, %v1725_v32   ;;  %v426_v46 = vld [vmem:[#allocation2 + $0x148] sm:$0xff] }
 0x207   :  { %1379 = vset.pattern.permute.xlu0 %v1468_v28 }
 0x208   :  { %568 = vperm.xlu0 %1379, %v1737_v34   ;;  %v530_v58 = vadd.f32 %v522_v54, %v473_v55 }
 0x20c   :  { %v606_v63 = vpop.permute.xlu0 %605 }
 0x20d   :  { %v549_v0 = vpop.permute.xlu1 %548  ;;  %v636_v5 = vmul.f32 %v606_v63, %v596_v62  ;;  %v313_v62 = vld [vmem:[#allocation2 + $0xd0] sm:$0xff]  ;;  %v597_v63 = vld [vmem:[#allocation2 + $0x208] sm:$0xff] }
 0x20e   :  { %v579_v1 = vmul.f32 %v549_v0, %v539_v60  ;;  %1366 = vset.pattern.permute.xlu2 %v1470_v25  ;;  %v370_v60 = vld [vmem:[#allocation2 + $0x110] sm:$0xff] }
 0x20f   :  { %v1783_v4 = vpop.permute.xlu2 %723  ;;  %731 = vperm.xlu2 %1366, %v1725_v32   ;;  %v871_v32 = vsel %vm855_vm1, %v1797_v20, -inf  ;;  %v427_v0 = vld [vmem:[#allocation2 + $0x150] sm:$0xff] }
 0x210   :  { %v587_v6 = vadd.f32 %v579_v1, %v530_v58  ;;  %1382 = vset.pattern.permute.xlu0 %v1466_v22 }
 0x211   :  { %351 = vperm.xlu0 %1382, %v1744_v35  }
 0x212   :  { %v644_v11 = vadd.f32 %v636_v5, %v587_v6 }
 0x214   :  { %v701_v13 = vadd.f32 %v693_v10, %v644_v11 }
 0x216   :  { %v720_v16 = vpop.permute.xlu1 %719  ;;  %863 = vmax.xlane.f32.xlu1 %v862_v15 }
 0x217   :  { %v750_v19 = vmul.f32 %v720_v16, %v710_v12  ;;  %v327_v21 = vpop.permute.xlu0 %326  ;;  %1369 = vset.pattern.permute.xlu2 %v1465_v24  ;;  %v694_v12 = vmul.f32 %v1775_v56, %v654_v2  ;;  %v140_v56 = vld [vmem:[#allocation2 + $0x48] sm:$0xff] }
 0x218   :  { %v386_v23 = vpop.permute.xlu2 %385  ;;  %450 = vperm.xlu2 %1369, %v1731_v33   ;;  %v360_v40 = vmul.f32 %v327_v21, %v312_v31 }
 0x219   :  { %v1794_v26 = vadd.f32 %v750_v19, %v701_v13  ;;  %1384 = vset.pattern.permute.xlu0 %v1465_v24  ;;  %v410_v3 = vmul.f32 %v386_v23, %v370_v60  ;;  %v484_v19 = vld [vmem:[#allocation2 + $0x190] sm:$0xff] }
 0x21a   :  { %458 = vperm.xlu0 %1384, %v1744_v35   ;;  %v541_v23 = vld [vmem:[#allocation2 + $0x1d0] sm:$0xff] }
 0x21e   :  { %872 = vmax.xlane.f32.xlu1 %v871_v32 }
 0x21f   :  { %v382_v41 = vpop.permute.xlu1 %381 }
 0x220   :  { %v409_v42 = vmul.f32 %v382_v41, %v369_v39  ;;  %v496_v43 = vpop.permute.xlu0 %495  ;;  %1370 = vset.pattern.permute.xlu2 %v1464_v18 }
 0x221   :  { %v443_v44 = vpop.permute.xlu2 %442  ;;  %507 = vperm.xlu2 %1370, %v1731_v33   ;;  %v523_v54 = vmul.f32 %v496_v43, %v483_v48  ;;  %v371_v43 = vld [vmem:[#allocation2 + $0x118] sm:$0xff]  ;;  %v655_v48 = vld [vmem:[#allocation2 + $0x250] sm:$0xff] }
 0x222   :  { %v417_v45 = vadd.f32 %v409_v42, %v360_v40  ;;  %1388 = vset.pattern.permute.xlu0 %v1469_v30  ;;  %v467_v10 = vmul.f32 %v443_v44, %v427_v0  ;;  %v485_v0 = vld [vmem:[#allocation2 + $0x198] sm:$0xff] }
 0x228   :  { %v439_v49 = vpop.permute.xlu1 %438 }
 0x229   :  { %v466_v50 = vmul.f32 %v439_v49, %v426_v46  ;;  %v553_v51 = vpop.permute.xlu0 %552  ;;  %1374 = vset.pattern.permute.xlu2 %v1470_v25  ;;  %v314_v46 = vld [vmem:[#allocation2 + $0xd8] sm:$0xff] }
 0x22a   :  { %v557_v53 = vpop.permute.xlu2 %556  ;;  %735 = vperm.xlu2 %1374, %v1731_v33   ;;  %v580_v59 = vmul.f32 %v553_v51, %v540_v52  ;;  %v711_v33 = vld [vmem:[#allocation2 + $0x288] sm:$0xff] }
 0x22b   :  { %v474_v55 = vadd.f32 %v466_v50, %v417_v45  ;;  %v751_v15 = vmul.f32 %v1783_v4, %v711_v33  ;;  %v581_v40 = vmul.f32 %v557_v53, %v541_v23  ;;  %v598_v45 = vld [vmem:[#allocation2 + $0x210] sm:$0xff] }
 0x22c   :  { %v712_v53 = vld [vmem:[#allocation2 + $0x290] sm:$0xff] }
 0x22d   :  { %v531_v58 = vadd.f32 %v523_v54, %v474_v55 }
 0x22f   :  { %v588_v61 = vadd.f32 %v580_v59, %v531_v58 }
 0x231   :  { %v332_v1 = vpop.permute.xlu1 %331 }
 0x232   :  { %v610_v5 = vpop.permute.xlu0 %609  ;;  %v361_v6 = vmul.f32 %v332_v1, %v313_v62  ;;  %1375 = vset.pattern.permute.xlu2 %v1466_v22  ;;  %v840_v22 = vmul.f32 %v1755_v38, %v131_v17 }
 0x233   :  { %v637_v8 = vmul.f32 %v610_v5, %v597_v63  ;;  %v671_v9 = vpop.permute.xlu2 %670  ;;  %346 = vperm.xlu2 %1375, %v1737_v34   ;;  %v428_v63 = vld [vmem:[#allocation2 + $0x158] sm:$0xff] }
 0x234   :  { %v418_v11 = vadd.f32 %v410_v3, %v361_v6  ;;  %v1817_v41 = vadd.f32 %v840_v22, %v140_v56  ;;  %v695_v55 = vmul.f32 %v671_v9, %v655_v48 }
 0x235   :  { %v645_v13 = vadd.f32 %v637_v8, %v588_v61  ;;  %v542_v8 = vld [vmem:[#allocation2 + $0x1d8] sm:$0xff] }
 0x236   :  { %v475_v14 = vadd.f32 %v467_v10, %v418_v11  ;;  %v859_v38 = vsel %vm855_vm1, %v1817_v41, -inf }
 0x237   :  { %v702_v16 = vadd.f32 %v694_v12, %v645_v13  ;;  %462 = vperm.xlu1 %1391, %v1753_v37   ;;  %v315_v12 = vld [vmem:[#allocation2 + $0xe0] sm:$0xff] }
 0x238   :  { %v372_v13 = vld [vmem:[#allocation2 + $0x120] sm:$0xff] }
 0x239   :  { %v1812_v21 = vadd.f32 %v751_v15, %v702_v16  ;;  %v599_v15 = vld [vmem:[#allocation2 + $0x218] sm:$0xff] }
 0x23a   :  { %v390_v44 = vpop.permute.xlu1 %389 }
 0x23b   :  { %v500_v31 = vpop.permute.xlu0 %499  ;;  %1376 = vset.pattern.permute.xlu2 %v1469_v30  ;;  %v411_v50 = vmul.f32 %v390_v44, %v371_v43 }
 0x23c   :  { %v524_v32 = vmul.f32 %v500_v31, %v484_v19  ;;  %v728_v39 = vpop.permute.xlu2 %727  ;;  %397 = vperm.xlu2 %1376, %v1737_v34   ;;  %v656_v19 = vld [vmem:[#allocation2 + $0x258] sm:$0xff] }
 0x23d   :  { %v752_v60 = vmul.f32 %v728_v39, %v712_v53  ;;  %v486_v53 = vld [vmem:[#allocation2 + $0x1a0] sm:$0xff] }
 0x23e   :  { %v532_v4 = vadd.f32 %v524_v32, %v475_v14 }
 0x23f   :  { %1393 = vset.pattern.permute.xlu1 %v1464_v18 }
 0x240   :  { %v589_v42 = vadd.f32 %v581_v40, %v532_v4  ;;  %v713_v4 = vld [vmem:[#allocation2 + $0x298] sm:$0xff] }
 0x243   :  { %v342_v14 = vpop.permute.xlu1 %341 }
 0x244   :  { %v614_v49 = vpop.permute.xlu0 %613  ;;  %860 = vmax.xlane.f32.xlu0 %v859_v38  ;;  %1377 = vset.pattern.permute.xlu2 %v1465_v24  ;;  %v363_v16 = vmul.f32 %v342_v14, %v315_v12 }
 0x245   :  { %v638_v51 = vmul.f32 %v614_v49, %v598_v45  ;;  %v337_v52 = vpop.permute.xlu2 %336  ;;  %454 = vperm.xlu2 %1377, %v1737_v34   ;;  %v429_v45 = vld [vmem:[#allocation2 + $0x160] sm:$0xff] }
 0x246   :  { %v362_v54 = vmul.f32 %v337_v52, %v314_v46  ;;  %v543_v52 = vld [vmem:[#allocation2 + $0x1e0] sm:$0xff] }
 0x247   :  { %v646_v58 = vadd.f32 %v638_v51, %v589_v42 }
 0x248   :  { %v419_v59 = vadd.f32 %v411_v50, %v362_v54  ;;  %v134_v50 = vld [vmem:[#allocation2 + $0x20] sm:$0xff] }
 0x249   :  { %v703_v61 = vadd.f32 %v695_v55, %v646_v58  ;;  %v843_v51 = vmul.f32 %v1779_v57, %v134_v50  ;;  %v143_v54 = vld [vmem:[#allocation2 + $0x60] sm:$0xff]  ;;  %v430_v50 = vld [vmem:[#allocation2 + $0x168] sm:$0xff] }
 0x24a   :  { %v600_v55 = vld [vmem:[#allocation2 + $0x220] sm:$0xff] }
 0x24b   :  { %v1824_v62 = vadd.f32 %v752_v60, %v703_v61  ;;  %v130_v61 = vld [vmem:[#allocation2] sm:$0xff] }
 0x24d   :  { %1378 = vset.pattern.permute.xlu2 %v1464_v18  ;;  %v504_v1 = vpop.permute.xlu0 %503 }
 0x24e   :  { %v447_v24 = vpop.permute.xlu2 %446  ;;  %511 = vperm.xlu2 %1378, %v1737_v34   ;;  %v525_v3 = vmul.f32 %v504_v1, %v485_v0  ;;  %v622_v0 = vpop.permute.xlu1 %621  ;;  %v1838_v1 = vadd.f32 %v843_v51, %v143_v54 }
 0x24f   :  { %v468_v2 = vmul.f32 %v447_v24, %v428_v63  ;;  %v657_v63 = vld [vmem:[#allocation2 + $0x260] sm:$0xff]  ;;  %v136_v24 = vld [vmem:[#allocation2 + $0x30] sm:$0xff] }
 0x251   :  { %v476_v5 = vadd.f32 %v468_v2, %v419_v59  ;;  %v833_v59 = vpop.f32.mrf.mxu3  ;;  %v640_v2 = vmul.f32 %v622_v0, %v600_v55  ;;  %v487_v55 = vld [vmem:[#allocation2 + $0x1a8] sm:$0xff] }
 0x252   :  { %v601_v0 = vld [vmem:[#allocation2 + $0x228] sm:$0xff] }
 0x253   :  { %v533_v6 = vadd.f32 %v525_v3, %v476_v5 }
 0x256   :  { %1380 = vset.pattern.permute.xlu2 %v1467_v27  ;;  %v675_v9 = vpop.permute.xlu0 %674 }
 0x257   :  { %v561_v33 = vpop.permute.xlu2 %560  ;;  %625 = vperm.xlu2 %1380, %v1737_v34   ;;  %v696_v39 = vmul.f32 %v675_v9, %v656_v19  ;;  %v845_v9 = vmul.f32 %v833_v59, %v136_v24 }
 0x258   :  { %v582_v10 = vmul.f32 %v561_v33, %v542_v8  ;;  %405 = vperm.xlu0 %1388, %v1753_v37   ;;  %v868_v33 = vsel %vm855_vm1, %v1838_v1, -inf }
 0x25a   :  { %v590_v11 = vadd.f32 %v582_v10, %v533_v6  ;;  %v839_v6 = vmul.f32 %v1746_v36, %v130_v61  ;;  %v139_v10 = vld [vmem:[#allocation2 + $0x40] sm:$0xff]  ;;  %v836_v36 = vpop.f32.mrf.mxu3 }
 0x25f   :  { %1381 = vset.pattern.permute.xlu2 %v1471_v29  ;;  %v394_v17 = vpop.permute.xlu0 %393 }
 0x260   :  { %v618_v22 = vpop.permute.xlu2 %617  ;;  %682 = vperm.xlu2 %1381, %v1737_v34   ;;  %v412_v23 = vmul.f32 %v394_v17, %v372_v13  ;;  %1389 = vset.pattern.permute.xlu0 %v1467_v27  ;;  %v145_v13 = vld [vmem:[#allocation2 + $0x70] sm:$0xff] }
 0x261   :  { %v639_v31 = vmul.f32 %v618_v22, %v599_v15  ;;  %v1845_v19 = vadd.f32 %v845_v9, %v145_v13  ;;  %v137_v22 = vld [vmem:[#allocation2 + $0x38] sm:$0xff] }
 0x262   :  { %v420_v32 = vadd.f32 %v412_v23, %v363_v16  ;;  %v1843_v16 = vadd.f32 %v839_v6, %v139_v10  ;;  %v573_v6 = vpop.permute.xlu1 %572  ;;  %v318_v9 = vld [vmem:[#allocation2 + $0xf8] sm:$0xff] }
 0x263   :  { %v647_v56 = vadd.f32 %v639_v31, %v590_v11  ;;  %v714_v11 = vld [vmem:[#allocation2 + $0x2a0] sm:$0xff]  ;;  %v375_v10 = vld [vmem:[#allocation2 + $0x138] sm:$0xff] }
 0x264   :  { %v856_v31 = vsel %vm855_vm1, %v1843_v16, -inf }
 0x265   :  { %v704_v40 = vadd.f32 %v696_v39, %v647_v56  ;;  %v874_v39 = vsel %vm855_vm1, %v1845_v19, -inf  ;;  %v146_v56 = vld [vmem:[#allocation2 + $0x78] sm:$0xff] }
 0x268   :  { %1383 = vset.pattern.permute.xlu2 %v1469_v30  ;;  %v565_v48 = vpop.permute.xlu0 %564 }
 0x269   :  { %v732_v42 = vpop.permute.xlu2 %731  ;;  %v583_v60 = vmul.f32 %v565_v48, %v543_v52 }
 0x26a   :  { %v753_v43 = vmul.f32 %v732_v42, %v713_v4 }
 0x26c   :  { %v1835_v44 = vadd.f32 %v753_v43, %v704_v40  ;;  %v316_v43 = vld [vmem:[#allocation2 + $0xe8] sm:$0xff] }
 0x271   :  { %v679_v5 = vpop.permute.xlu0 %678 }
 0x272   :  { %v451_v38 = vpop.permute.xlu2 %450  ;;  %v697_v57 = vmul.f32 %v679_v5, %v657_v63 }
 0x273   :  { %v469_v46 = vmul.f32 %v451_v38, %v429_v45  ;;  %v373_v45 = vld [vmem:[#allocation2 + $0x128] sm:$0xff] }
 0x275   :  { %v477_v49 = vadd.f32 %v469_v46, %v420_v32  ;;  %v846_v32 = vmul.f32 %v836_v36, %v137_v22 }
 0x277   :  { %v1853_v4 = vadd.f32 %v846_v32, %v146_v56 }
 0x279   :  { %v877_v42 = vsel %vm855_vm1, %v1853_v4, -inf }
 0x27a   :  { %v569_v54 = vpop.permute.xlu0 %568 }
 0x27b   :  { %v508_v58 = vpop.permute.xlu2 %507 }
 0x27c   :  { %v526_v30 = vmul.f32 %v508_v58, %v486_v53  ;;  %v544_v58 = vld [vmem:[#allocation2 + $0x1e8] sm:$0xff] }
 0x27e   :  { %v534_v3 = vadd.f32 %v526_v30, %v477_v49  ;;  %v584_v30 = vmul.f32 %v569_v54, %v544_v58 }
 0x280   :  { %v591_v8 = vadd.f32 %v583_v60, %v534_v3 }
 0x282   :  { %869 = vmax.xlane.f32.xlu0 %v868_v33  ;;  %v648_v12 = vadd.f32 %v640_v2, %v591_v8  ;;  %v357_v33 = vpop.permute.xlu1 %356 }
 0x283   :  { %v352_v24 = vpop.permute.xlu0 %351 }
 0x284   :  { %v736_v14 = vpop.permute.xlu2 %735  ;;  %v705_v15 = vadd.f32 %v697_v57, %v648_v12 }
 0x285   :  { %v754_v17 = vmul.f32 %v736_v14, %v714_v11  ;;  %v366_v14 = vmul.f32 %v357_v33, %v318_v9 }
 0x287   :  { %v1847_v23 = vadd.f32 %v754_v17, %v705_v15  ;;  %v142_v17 = vld [vmem:[#allocation2 + $0x58] sm:$0xff] }
 0x289   :  { %857 = vmax.xlane.f32.xlu2 %v856_v31  ;;  %v149_v31 = vld [vmem:[#allocation2 + $0x88] sm:$0xff] }
 0x28a   :  { %875 = vmax.xlane.f32.xlu0 %v874_v39 }
 0x28d   :  { %v347_v40 = vpop.permute.xlu2 %346 }
 0x28e   :  { %v364_v46 = vmul.f32 %v347_v40, %v316_v43 }
 0x292   :  { %878 = vmax.xlane.f32.xlu0 %v877_v42 }
 0x296   :  { %v398_v38 = vpop.permute.xlu2 %397 }
 0x297   :  { %v413_v48 = vmul.f32 %v398_v38, %v373_v45  ;;  %v317_v38 = vld [vmem:[#allocation2 + $0xf0] sm:$0xff] }
 0x299   :  { %v421_v49 = vadd.f32 %v413_v48, %v364_v46  ;;  %v374_v46 = vld [vmem:[#allocation2 + $0x130] sm:$0xff] }
 0x29a   :  { %v431_v48 = vld [vmem:[#allocation2 + $0x170] sm:$0xff] }
 0x29f   :  { %v455_v51 = vpop.permute.xlu2 %454 }
 0x2a0   :  { %v470_v52 = vmul.f32 %v455_v51, %v430_v50  ;;  %v365_v50 = vmul.f32 %v352_v24, %v317_v38 }
 0x2a1   :  { %401 = vperm.xlu2 %1383, %v1744_v35  }
 0x2a2   :  { %v478_v53 = vadd.f32 %v470_v52, %v421_v49 }
 0x2a6   :  { %629 = vperm.xlu0 %1389, %v1744_v35  }
 0x2a8   :  { %v512_v59 = vpop.permute.xlu2 %511 }
 0x2a9   :  { %v527_v60 = vmul.f32 %v512_v59, %v487_v55  ;;  %1385 = vset.pattern.permute.xlu2 %v1464_v18  ;;  %v459_v18 = vpop.permute.xlu0 %458 }
 0x2aa   :  { %515 = vperm.xlu2 %1385, %v1744_v35   ;;  %v471_v55 = vmul.f32 %v459_v18, %v431_v48  ;;  %v155_v18 = vld [vmem:[#allocation2 + $0xb8] sm:$0xff] }
 0x2ab   :  { %v535_v61 = vadd.f32 %v527_v60, %v478_v53 }
 0x2ad   :  { %v592_v63 = vadd.f32 %v584_v30, %v535_v61  ;;  %v488_v30 = vld [vmem:[#allocation2 + $0x1b0] sm:$0xff] }
 0x2ae   :  { %1390 = vset.pattern.permute.xlu0 %v1470_v25  ;;  %v545_v61 = vld [vmem:[#allocation2 + $0x1f0] sm:$0xff] }
 0x2af   :  { %739 = vperm.xlu0 %1390, %v1737_v34   ;;  %v133_v34 = vld [vmem:[#allocation2 + $0x18] sm:$0xff]  ;;  %v585_v24 = vmul.f32 %v573_v6, %v545_v61  ;;  %v864_v6 = vpop.xlane.xlu1 %863 }
 0x2b0   :  { %v842_v12 = vmul.f32 %v1770_v47, %v133_v34  ;;  %v882_v34 = vsub.f32 %v1788_v7, %v864_v6  ;;  %v151_v7 = vld [vmem:[#allocation2 + $0x98] sm:$0xff] }
 0x2b1   :  { %v626_v2 = vpop.permute.xlu2 %625 }
 0x2b2   :  { %v641_v3 = vmul.f32 %v626_v2, %v601_v0  ;;  %1392 = vset.pattern.permute.xlu2 %v1471_v29  ;;  %v850_v22 = vadd.f32 %v842_v12, %v142_v17  ;;  %v892_v9 = vmul.f32 1.442695, %v882_v34 }
 0x2b4   :  { %v1864_v5 = vadd.f32 %v641_v3, %v592_v63  ;;  %v865_v36 = vsel %vm855_vm1, %v850_v22, -inf }
 0x2b7   :  { %743 = vperm.xlu0 %1390, %v1744_v35   ;;  %v861_v57 = vpop.xlane.xlu0 %860  ;;  %v873_v17 = vpop.xlane.xlu1 %872 }
 0x2b8   :  { %v881_v8 = vsub.f32 %v1817_v41, %v861_v57 }
 0x2ba   :  { %v890_v11 = vmul.f32 1.442695, %v881_v8  ;;  %v1880_v47 = vpop.permute.xlu2 %682 }
 0x2bc   :  { %1401 = vpow2.f32 %v890_v11 }
 0x2bf   :  { %1396 = vset.pattern.permute.xlu0 %v1471_v29 }
 0x2c0   :  { %690 = vperm.xlu0 %1396, %v1753_v37  }
 0x2c2   :  { %v1402_v41 = vpop.eup %1401 }
 0x2c3   :  { %v1875_v32 = vmul.f32 %v1402_v41, %v149_v31  ;;  %v885_v41 = vsub.f32 %v1797_v20, %v873_v17 }
 0x2c5   :  { %v915_v39 = vsel %vm855_vm1, %v1875_v32, 0.0  ;;  %v898_v31 = vmul.f32 1.442695, %v885_v41 }
 0x2c8   :  { %1398 = vset.pattern.permute.xlu0 %v1470_v25 }
 0x2ca   :  { %v406_v13 = vpop.permute.xlu0 %405 }
 0x2cb   :  { %v415_v15 = vmul.f32 %v406_v13, %v375_v10  ;;  %v150_v13 = vld [vmem:[#allocation2 + $0x90] sm:$0xff] }
 0x2cd   :  { %v1872_v29 = vadd.f32 %v415_v15, %v366_v14 }
 0x2d3   :  { %866 = vmax.xlane.f32.xlu2 %v865_v36 }
 0x2db   :  { %916 = vadd.xlane.f32.xlu2 %v915_v39 }
 0x2f3   :  { %686 = vperm.xlu2 %1392, %v1744_v35   ;;  %v148_v35 = vld [vmem:[#allocation2 + $0x80] sm:$0xff] }
 0x2f5   :  { %v870_v56 = vpop.xlane.xlu0 %869 }
 0x2f6   :  { %v884_v14 = vsub.f32 %v1838_v1, %v870_v56  ;;  %v152_v56 = vld [vmem:[#allocation2 + $0xa0] sm:$0xff] }
 0x2f8   :  { %v896_v15 = vmul.f32 1.442695, %v884_v14 }
 0x2fb   :  { %1397 = vset.pattern.permute.xlu2 %v1470_v25 }
 0x2fc   :  { %v858_v40 = vpop.xlane.xlu2 %857 }
 0x2fd   :  { %v880_v42 = vsub.f32 %v1843_v16, %v858_v40  ;;  %v1884_v43 = vpop.xlane.xlu0 %875 }
 0x2fe   :  { %v886_v40 = vsub.f32 %v1845_v19, %v1884_v43  ;;  %v463_v43 = vpop.permute.xlu1 %462 }
 0x2ff   :  { %v888_v45 = vmul.f32 1.442695, %v880_v42 }
 0x301   :  { %1403 = vpow2.f32 %v888_v45  ;;  %v900_v45 = vmul.f32 1.442695, %v886_v40 }
 0x304   :  { %v402_v49 = vpop.permute.xlu2 %401 }
 0x305   :  { %v414_v51 = vmul.f32 %v402_v49, %v374_v46  ;;  %v879_v52 = vpop.xlane.xlu0 %878  ;;  %v153_v46 = vld [vmem:[#allocation2 + $0xa8] sm:$0xff] }
 0x306   :  { %v887_v53 = vsub.f32 %v1853_v4, %v879_v52 }
 0x307   :  { %v1404_v54 = vpop.eup %1403  ;;  %v422_v25 = vadd.f32 %v414_v51, %v365_v50  ;;  %v154_v51 = vld [vmem:[#allocation2 + $0xb0] sm:$0xff] }
 0x308   :  { %v1887_v58 = vmul.f32 %v1404_v54, %v148_v35  ;;  %v902_v59 = vmul.f32 1.442695, %v887_v53 }
 0x309   :  { %v479_v16 = vadd.f32 %v471_v55, %v422_v25 }
 0x30a   :  { %v912_v60 = vsel %vm855_vm1, %v1887_v58, 0.0  ;;  %1405 = vpow2.f32 %v902_v59 }
 0x30b   :  { %913 = vadd.xlane.f32.xlu1 %v912_v60  ;;  %1407 = vpow2.f32 %v892_v9 }
 0x30c   :  { %v516_v63 = vpop.permute.xlu2 %515 }
 0x30d   :  { %v528_v0 = vmul.f32 %v516_v63, %v488_v30 }
 0x30f   :  { %v536_v2 = vadd.f32 %v528_v0, %v479_v16 }
 0x310   :  { %v1406_v4 = vpop.eup %1405 }
 0x311   :  { %v1891_v3 = vadd.f32 %v585_v24, %v536_v2  ;;  %v1893_v57 = vmul.f32 %v1406_v4, %v155_v18  ;;  %v1408_v12 = vpop.eup %1407 }
 0x313   :  { %v933_v8 = vsel %vm855_vm1, %v1893_v57, 0.0 }
 0x31c   :  { %934 = vadd.xlane.f32.xlu2 %v933_v8 }
 0x324   :  { %519 = vperm.xlu1 %1393, %v1753_v37  }
 0x32c   :  { %1394 = vset.pattern.permute.xlu1 %v1468_v28  ;;  %v1904_v28 = vmul.f32 %v1408_v12, %v150_v13  ;;  %v489_v13 = vld [vmem:[#allocation2 + $0x1b8] sm:$0xff] }
 0x32d   :  { %576 = vperm.xlu1 %1394, %v1753_v37  }
 0x334   :  { %747 = vperm.xlu2 %1397, %v1753_v37  }
 0x335   :  { %1395 = vset.pattern.permute.xlu1 %v1467_v27  ;;  %v918_v27 = vsel %vm855_vm1, %v1904_v28, 0.0 }
 0x346   :  { %v867_v33 = vpop.xlane.xlu2 %866 }
 0x347   :  { %v883_v10 = vsub.f32 %v850_v22, %v867_v33 }
 0x349   :  { %v894_v11 = vmul.f32 1.442695, %v883_v10  ;;  %v432_v10 = vld [vmem:[#allocation2 + $0x178] sm:$0xff] }
 0x34b   :  { %1409 = vpow2.f32 %v894_v11 }
 0x34c   :  { %1411 = vpow2.f32 %v896_v15  ;;  %v472_v15 = vmul.f32 %v463_v43, %v432_v10 }
 0x34d   :  { %1413 = vpow2.f32 %v898_v31 }
 0x34e   :  { %1415 = vpow2.f32 %v900_v45  ;;  %v917_v19 = vpop.xlane.xlu2 %916 }
 0x34f   :  { %1417 = vrcp.f32 %v917_v19  ;;  %v961_v18 = vand.u32 2147483648, %v917_v19  ;;  %vm955_vm7 = vweird.f32 %v917_v19  ;;  %v959_v6 = vand.u32 2147483647, %v917_v19 }
 0x351   :  { %v1410_v36 = vpop.eup %1409  ;;  %v962_v11 = vor.u32 1.1754944e-38, %v961_v18  ;;  %vm960_vm9 = vcmp.eq.f32.partialorder %v959_v6, 8.507059e+37  ;;  %v1156_v6 = vld [vmem:[%s2034_s3 + $0x18] sm:$0xff] }
 0x352   :  { %v1909_v22 = vmul.f32 %v1410_v36, %v151_v7  ;;  %v1412_v39 = vpop.eup %1411  ;;  %1197 = vmatpush.msrb.mxu1 %v1156_v6 }
 0x353   :  { %v1915_v42 = vmul.f32 %v1412_v39, %v152_v56  ;;  %v1414_v38 = vpop.eup %1413 }
 0x354   :  { %v921_v1 = vsel %vm855_vm1, %v1909_v22, 0.0  ;;  %v1919_v48 = vmul.f32 %v1414_v38, %v153_v46  ;;  %v1416_v50 = vpop.eup %1415 }
 0x355   :  { %v924_v20 = vsel %vm855_vm1, %v1915_v42, 0.0  ;;  %v1923_v52 = vmul.f32 %v1416_v50, %v154_v51  ;;  %v1418_v53 = vpop.eup %1417 }
 0x356   :  { %v927_v49 = vsel %vm855_vm1, %v1919_v48, 0.0  ;;  %v951_v55 = vmul.f32 %v1418_v53, %v917_v19  ;;  %vm956_vm4 = vweird.f32 %v1418_v53 }
 0x357   :  { %919 = vadd.xlane.f32.xlu1 %v918_v27  ;;  %v930_v35 = vsel %vm855_vm1, %v1923_v52, 0.0  ;;  %vm957_vm8 = vmor %vm955_vm7, %vm956_vm4  ;;  %v480_v27 = vadd.f32 %v472_v15, %v1872_v29 }
 0x358   :  { %v952_v16 = vsub.f32 1.0, %v951_v55 }
 0x35a   :  { %v953_v30 = vmul.f32 %v1418_v53, %v952_v16 }
 0x35c   :  { %v954_v2 = vadd.f32 %v1418_v53, %v953_v30 }
 0x35e   :  { %v958_v33 = vsel %vm957_vm8, %v1418_v53, %v954_v2  ;;  %v1940_v53 = vpop.permute.xlu2 %686 }
 0x35f   :  { %922 = vadd.xlane.f32.xlu1 %v921_v1  ;;  %v963_v14 = vsel %vm960_vm9, %v962_v11, %v958_v33 }
 0x360   :  { %v1049_v7 = vmul.f32 %v963_v14, %v1875_v32  ;;  %v715_v14 = vld [vmem:[#allocation2 + $0x2a8] sm:$0xff] }
 0x367   :  { %925 = vadd.xlane.f32.xlu1 %v924_v20 }
 0x36f   :  { %928 = vadd.xlane.f32.xlu1 %v927_v49 }
 0x377   :  { %931 = vadd.xlane.f32.xlu1 %v930_v35 }
 0x37e   :  { %v914_v54 = vpop.xlane.xlu1 %913 }
 0x37f   :  { %1419 = vrcp.f32 %v914_v54  ;;  %v947_v61 = vand.u32 2147483648, %v914_v54  ;;  %v945_v0 = vand.u32 2147483647, %v914_v54  ;;  %vm941_vm3 = vweird.f32 %v914_v54 }
 0x381   :  { %v948_v4 = vor.u32 1.1754944e-38, %v947_v61  ;;  %vm946_vm6 = vcmp.eq.f32.partialorder %v945_v0, 8.507059e+37 }
 0x385   :  { %v1420_v25 = vpop.eup %1419 }
 0x386   :  { %v937_v59 = vmul.f32 %v1420_v25, %v914_v54  ;;  %vm942_vm2 = vweird.f32 %v1420_v25 }
 0x387   :  { %vm943_vm5 = vmor %vm941_vm3, %vm942_vm2 }
 0x388   :  { %v938_v60 = vsub.f32 1.0, %v937_v59 }
 0x38a   :  { %v939_v63 = vmul.f32 %v1420_v25, %v938_v60 }
 0x38c   :  { %v940_v24 = vadd.f32 %v1420_v25, %v939_v63  ;;  %v630_v63 = vpop.permute.xlu0 %629 }
 0x38e   :  { %v944_v8 = vsel %vm943_vm5, %v1420_v25, %v940_v24 }
 0x38f   :  { %v949_v34 = vsel %vm946_vm6, %v948_v4, %v944_v8  ;;  %v1945_v4 = vpop.xlane.xlu2 %934 }
 0x390   :  { %633 = vperm.xlu1 %1395, %v1753_v37   ;;  %v1048_v9 = vmul.f32 %v949_v34, %v1887_v58  ;;  %v1057_v58 = vadd.f32 %v1049_v7, %v1812_v21  ;;  %v1154_v7 = vld [vmem:[%s2034_s3 + $0x8] sm:$0xff]  ;;  %v1045_v6 = vand.u32 2147483648, %v1945_v4 }
 0x392   :  { %v1056_v12 = vadd.f32 %v1048_v9, %v1794_v26 }
 0x394   :  { %1279 = vmatmul.msk.f32.vlgmr.msrb.gmra.mxu0 %vm855_vm1, %v1056_v12  ;;  %v658_v12 = vld [vmem:[#allocation2 + $0x268] sm:$0xff]  ;;  %v740_v15 = vpop.permute.xlu0 %739 }
 0x396   :  { %v520_v17 = vpop.permute.xlu1 %519 }
 0x397   :  { %v529_v36 = vmul.f32 %v520_v17, %v489_v13 }
 0x399   :  { %v1933_v37 = vadd.f32 %v529_v36, %v480_v27  ;;  %v1155_v36 = vld [vmem:[%s2034_s3 + $0x10] sm:$0xff] }
 0x39a   :  { %1198 = vmatpush.msrb.mxu1 %v1155_v36 }
 0x39c   :  { %1280 = vmatmul.msk.f32.gmra.mxu0 %vm855_vm1, %v1057_v58  ;;  %v698_v58 = vmul.f32 %v1880_v47, %v658_v12  ;;  %1199 = vmatpush.msrb.mxu1 %v1154_v7  ;;  %v1153_v47 = vld [vmem:[%s2034_s3] sm:$0xff] }
 0x39e   :  { %1200 = vmatpush.msrb.mxu1 %v1153_v47 }
 0x39f   :  { %v1937_v41 = vpop.permute.xlu1 %576 }
 0x3ca   :  { %v920_v26 = vpop.xlane.xlu1 %919 }
 0x3cb   :  { %1421 = vrcp.f32 %v920_v26  ;;  %v975_v29 = vand.u32 2147483648, %v920_v26  ;;  %v973_v45 = vand.u32 2147483647, %v920_v26  ;;  %vm969_vm11 = vweird.f32 %v920_v26 }
 0x3cd   :  { %v976_v21 = vor.u32 1.1754944e-38, %v975_v29  ;;  %vm974_vm13 = vcmp.eq.f32.partialorder %v973_v45, 8.507059e+37 }
 0x3d1   :  { %v1422_v31 = vpop.eup %1421 }
 0x3d2   :  { %v965_v1 = vmul.f32 %v1422_v31, %v920_v26  ;;  %v923_v39 = vpop.xlane.xlu1 %922  ;;  %vm970_vm10 = vweird.f32 %v1422_v31  ;;  %v602_v26 = vld [vmem:[#allocation2 + $0x230] sm:$0xff] }
 0x3d3   :  { %1423 = vrcp.f32 %v923_v39  ;;  %vm971_vm12 = vmor %vm969_vm11, %vm970_vm10  ;;  %v989_v35 = vand.u32 2147483648, %v923_v39  ;;  %v987_v54 = vand.u32 2147483647, %v923_v39  ;;  %vm983_vm15 = vweird.f32 %v923_v39 }
 0x3d4   :  { %v966_v56 = vsub.f32 1.0, %v965_v1  ;;  %v642_v45 = vmul.f32 %v630_v63, %v602_v26 }
 0x3d5   :  { %v990_v59 = vor.u32 1.1754944e-38, %v989_v35  ;;  %vm988_vm3 = vcmp.eq.f32.partialorder %v987_v54, 8.507059e+37 }
 0x3d6   :  { %v967_v40 = vmul.f32 %v1422_v31, %v966_v56  ;;  %v650_v35 = vadd.f32 %v642_v45, %v1891_v3 }
 0x3d8   :  { %v968_v32 = vadd.f32 %v1422_v31, %v967_v40 }
 0x3d9   :  { %v1424_v20 = vpop.eup %1423 }
 0x3da   :  { %v979_v38 = vmul.f32 %v1424_v20, %v923_v39  ;;  %v926_v46 = vpop.xlane.xlu1 %925  ;;  %v972_v49 = vsel %vm971_vm12, %v1422_v31, %v968_v32  ;;  %vm984_vm14 = vweird.f32 %v1424_v20  ;;  %v659_v32 = vld [vmem:[#allocation2 + $0x270] sm:$0xff] }
 0x3db   :  { %1425 = vrcp.f32 %v926_v46  ;;  %v977_v51 = vsel %vm974_vm13, %v976_v21, %v972_v49  ;;  %vm985_vm2 = vmor %vm983_vm15, %vm984_vm14  ;;  %v1001_v18 = vand.u32 2147483647, %v926_v46  ;;  %vm997_vm5 = vweird.f32 %v926_v46 }
 0x3dc   :  { %v980_v50 = vsub.f32 1.0, %v979_v38  ;;  %v1050_v19 = vmul.f32 %v977_v51, %v1904_v28  ;;  %v706_v21 = vadd.f32 %v698_v58, %v1864_v5  ;;  %v699_v51 = vmul.f32 %v1940_v53, %v659_v32 }
 0x3dd   :  { %vm1002_vm7 = vcmp.eq.f32.partialorder %v1001_v18, 8.507059e+37 }
 0x3de   :  { %v981_v43 = vmul.f32 %v1424_v20, %v980_v50  ;;  %v1058_v55 = vadd.f32 %v1050_v19, %v1824_v62  ;;  %v1003_v62 = vand.u32 2147483648, %v926_v46 }
 0x3e0   :  { %v982_v25 = vadd.f32 %v1424_v20, %v981_v43  ;;  %1281 = vmatmul.msk.f32.gmra.mxu0 %vm855_vm1, %v1058_v55 }
 0x3e1   :  { %v1426_v16 = vpop.eup %1425 }
 0x3e2   :  { %v993_v60 = vmul.f32 %v1426_v16, %v926_v46  ;;  %v929_v30 = vpop.xlane.xlu1 %928  ;;  %v986_v61 = vsel %vm985_vm2, %v1424_v20, %v982_v25  ;;  %vm998_vm4 = vweird.f32 %v1426_v16 }
 0x3e3   :  { %1427 = vrcp.f32 %v929_v30  ;;  %v991_v0 = vsel %vm988_vm3, %v990_v59, %v986_v61  ;;  %vm999_vm6 = vmor %vm997_vm5, %vm998_vm4  ;;  %v1017_v17 = vand.u32 2147483648, %v929_v30  ;;  %v1015_v1 = vand.u32 2147483647, %v929_v30  ;;  %v744_v59 = vpop.permute.xlu0 %743 }
 0x3e4   :  { %v994_v28 = vsub.f32 1.0, %v993_v60  ;;  %v1051_v24 = vmul.f32 %v991_v0, %v1909_v22  ;;  %1429 = vrcp.f32 %v1945_v4  ;;  %v1004_v22 = vor.u32 1.1754944e-38, %v1003_v62 }
 0x3e5   :  { %vm1011_vm9 = vweird.f32 %v929_v30  ;;  %v1018_v20 = vor.u32 1.1754944e-38, %v1017_v17  ;;  %vm1016_vm11 = vcmp.eq.f32.partialorder %v1015_v1, 8.507059e+37  ;;  %vm1039_vm3 = vweird.f32 %v1945_v4 }
 0x3e6   :  { %v995_v2 = vmul.f32 %v1426_v16, %v994_v28  ;;  %v1059_v8 = vadd.f32 %v1051_v24, %v1835_v44  ;;  %v546_v24 = vld [vmem:[#allocation2 + $0x1f8] sm:$0xff] }
 0x3e8   :  { %v996_v34 = vadd.f32 %v1426_v16, %v995_v2  ;;  %1282 = vmatmul.msk.f32.gmra.mxu0 %vm855_vm1, %v1059_v8  ;;  %v586_v8 = vmul.f32 %v1937_v41, %v546_v24  ;;  %v717_v41 = vld [vmem:[#allocation2 + $0x2b8] sm:$0xff] }
 0x3e9   :  { %v1428_v9 = vpop.eup %1427 }
 0x3ea   :  { %v1007_v33 = vmul.f32 %v1428_v9, %v929_v30  ;;  %v932_v10 = vpop.xlane.xlu1 %931  ;;  %v1000_v11 = vsel %vm999_vm6, %v1426_v16, %v996_v34  ;;  %vm1012_vm8 = vweird.f32 %v1428_v9  ;;  %v1962_v56 = vpop.eup %1429  ;;  %v716_v16 = vld [vmem:[#allocation2 + $0x2b0] sm:$0xff]  ;;  %v707_v30 = vadd.f32 %v699_v51, %v650_v35  ;;  %v603_v34 = vld [vmem:[#allocation2 + $0x238] sm:$0xff] }
 0x3eb   :  { %1431 = vrcp.f32 %v932_v10  ;;  %v1005_v13 = vsel %vm1002_vm7, %v1004_v22, %v1000_v11  ;;  %vm1013_vm10 = vmor %vm1011_vm9, %vm1012_vm8  ;;  %v1035_v46 = vmul.f32 %v1962_v56, %v1945_v4  ;;  %v1031_v54 = vand.u32 2147483648, %v932_v10  ;;  %v660_v22 = vld [vmem:[#allocation2 + $0x278] sm:$0xff] }
 0x3ec   :  { %v1008_v44 = vsub.f32 1.0, %v1007_v33  ;;  %v1052_v27 = vmul.f32 %v1005_v13, %v1915_v42  ;;  %v755_v42 = vmul.f32 %v740_v15, %v715_v14  ;;  %v1029_v5 = vand.u32 2147483647, %v932_v10  ;;  %v691_v33 = vpop.permute.xlu0 %690  ;;  %v748_v13 = vpop.permute.xlu2 %747 }
 0x3ed   :  { %v1036_v60 = vsub.f32 1.0, %v1035_v46  ;;  %vm1025_vm13 = vweird.f32 %v932_v10  ;;  %v1032_v63 = vor.u32 1.1754944e-38, %v1031_v54  ;;  %v756_v53 = vmul.f32 %v744_v59, %v716_v16 }
 0x3ee   :  { %v1009_v31 = vmul.f32 %v1428_v9, %v1008_v44  ;;  %v1060_v39 = vadd.f32 %v1052_v27, %v1847_v23  ;;  %v763_v50 = vadd.f32 %v755_v42, %v706_v21  ;;  %vm1030_vm15 = vcmp.eq.f32.partialorder %v1029_v5, 8.507059e+37 }
 0x3ef   :  { %v1037_v3 = vmul.f32 %v1962_v56, %v1036_v60  ;;  %v764_v0 = vadd.f32 %v756_v53, %v707_v30  ;;  %vm1040_vm2 = vweird.f32 %v1962_v56  ;;  %v1046_v44 = vor.u32 1.1754944e-38, %v1045_v6 }
 0x3f0   :  { %v1010_v40 = vadd.f32 %v1428_v9, %v1009_v31  ;;  %1283 = vmatmul.msk.f32.gmra.mxu0 %vm855_vm1, %v1060_v39  ;;  %vm1041_vm4 = vmor %vm1039_vm3, %vm1040_vm2  ;;  %v700_v14 = vmul.f32 %v691_v33, %v660_v22  ;;  %v757_v27 = vmul.f32 %v748_v13, %v717_v41 }
 0x3f1   :  { %v1432_v29 = vpop.eup %1431  ;;  %v1038_v18 = vadd.f32 %v1962_v56, %v1037_v3 }
 0x3f2   :  { %v1021_v23 = vmul.f32 %v1432_v29, %v932_v10  ;;  %v1014_v38 = vsel %vm1013_vm10, %v1428_v9, %v1010_v40  ;;  %vm1026_vm12 = vweird.f32 %v1432_v29  ;;  %v1043_v9 = vand.u32 2147483647, %v1945_v4  ;;  %v1400_v40 = vld [vmem:[%s2035_s4] ss:$0 sm:$0xff] }
 0x3f3   :  { %v1019_v49 = vsel %vm1016_vm11, %v1018_v20, %v1014_v38  ;;  %vm1027_vm14 = vmor %vm1025_vm13, %vm1026_vm12  ;;  %v594_v10 = vadd.f32 %v586_v8, %v1933_v37  ;;  %v1042_v12 = vsel %vm1041_vm4, %v1962_v56, %v1038_v18 }
 0x3f4   :  { %v1022_v19 = vsub.f32 1.0, %v1021_v23  ;;  %v1053_v43 = vmul.f32 %v1019_v49, %v1919_v48  ;;  %vm1044_vm5 = vcmp.eq.f32.partialorder %v1043_v9, 8.507059e+37 }
 0x3f5   :  { %v1047_v17 = vsel %vm1044_vm5, %v1046_v44, %v1042_v12 }
 0x3f6   :  { %v1023_v55 = vmul.f32 %v1432_v29, %v1022_v19  ;;  %v1061_v25 = vadd.f32 %v1053_v43, %v763_v50  ;;  %v1055_v7 = vmul.f32 %v1047_v17, %v1893_v57 }
 0x3f8   :  { %v1024_v61 = vadd.f32 %v1432_v29, %v1023_v55  ;;  %1284 = vmatmul.msk.f32.gmra.mxu0 %vm855_vm1, %v1061_v25 }
 0x3fa   :  { %v1028_v48 = vsel %vm1027_vm14, %v1432_v29, %v1024_v61 }
 0x3fb   :  { %v1033_v28 = vsel %vm1030_vm15, %v1032_v63, %v1028_v48 }
 0x3fc   :  { %v1054_v2 = vmul.f32 %v1033_v28, %v1923_v52 }
 0x3fe   :  { %v1062_v62 = vadd.f32 %v1054_v2, %v764_v0 }
 0x400   :  { %1285 = vmatmul.msk.f32.gmra.mxu0 %vm855_vm1, %v1062_v62 }
 0x402   :  { %v634_v52 = vpop.permute.xlu1 %633 }
 0x403   :  { %v643_v11 = vmul.f32 %v634_v52, %v603_v34 }
 0x405   :  { %v651_v15 = vadd.f32 %v643_v11, %v594_v10 }
 0x407   :  { %v708_v4 = vadd.f32 %v700_v14, %v651_v15 }
 0x409   :  { %v765_v36 = vadd.f32 %v757_v27, %v708_v4 }
 0x40b   :  { %v1063_v58 = vadd.f32 %v1055_v7, %v765_v36 }
 0x40d   :  { %1286 = vmatmul.msk.f32.gmra.mxu0 %vm855_vm1, %v1063_v58 }
 0x411   :  { %v1129_v26 = vpop.f32.mrf.mxu0 }
 0x412   :  { %1287 = vmatmul.msk.f32.vlgmr.msrb.gmra.mxu1 %vm64_vm0, %v1129_v26 }
 0x419   :  { %v1132_v37 = vpop.f32.mrf.mxu0 }
 0x41a   :  { %1288 = vmatmul.msk.f32.gmra.mxu1 %vm64_vm0, %v1132_v37 }
 0x45d   :  { %v1135_v31 = vpop.f32.mrf.mxu0 }
 0x45e   :  { %1289 = vmatmul.msk.f32.gmra.mxu1 %vm64_vm0, %v1135_v31 }
 0x465   :  { %v1138_v1 = vpop.f32.mrf.mxu0 }
 0x466   :  { %1290 = vmatmul.msk.f32.gmra.mxu1 %vm64_vm0, %v1138_v1 }
 0x46d   :  { %v1141_v39 = vpop.f32.mrf.mxu0 }
 0x46e   :  { %1291 = vmatmul.msk.f32.gmra.mxu1 %vm64_vm0, %v1141_v39 }
 0x475   :  { %v1144_v56 = vpop.f32.mrf.mxu0 }
 0x476   :  { %1292 = vmatmul.msk.f32.gmra.mxu1 %vm64_vm0, %v1144_v56 }
 0x47d   :  { %v1147_v57 = vpop.f32.mrf.mxu0 }
 0x47e   :  { %1293 = vmatmul.msk.f32.gmra.mxu1 %vm64_vm0, %v1147_v57 }
 0x48a   :  { %v1150_v42 = vpop.f32.mrf.mxu0 }
 0x48b   :  { %1294 = vmatmul.msk.f32.gmra.mxu1 %vm64_vm0, %v1150_v42 }
 0x48f   :  { %v1202_v29 = vpop.f32.mrf.mxu1 }
 0x490   :  { %v1203_v45 = vadd.f32 %v1400_v40, %v1202_v29 }
 0x492   :  { %1226 = vst.msk [vmem:[%s2040_s9] sm:$0xff] %vm64_vm0, %v1203_v45 }
 0x497   :  { %v1205_v32 = vpop.f32.mrf.mxu1 }
 0x498   :  { %v1206_v20 = vadd.f32 %v1400_v40, %v1205_v32 }
 0x49a   :  { %1227 = vst.msk [vmem:[%s2040_s9 + $0x8] sm:$0xff] %vm64_vm0, %v1206_v20 }
 0x4db   :  { %v1208_v47 = vpop.f32.mrf.mxu1 }
 0x4dc   :  { %v1209_v21 = vadd.f32 %v1400_v40, %v1208_v47 }
 0x4de   :  { %1228 = vst.msk [vmem:[%s2040_s9 + $0x10] sm:$0xff] %vm64_vm0, %v1209_v21 }
 0x4e3   :  { %v1211_v23 = vpop.f32.mrf.mxu1 }
 0x4e4   :  { %v1212_v38 = vadd.f32 %v1400_v40, %v1211_v23 }
 0x4e6   :  { %1229 = vst.msk [vmem:[%s2040_s9 + $0x18] sm:$0xff] %vm64_vm0, %v1212_v38 }
 0x4eb   :  { %v1214_v46 = vpop.f32.mrf.mxu1 }
 0x4ec   :  { %v1215_v49 = vadd.f32 %v1400_v40, %v1214_v46 }
 0x4ee   :  { %1230 = vst.msk [vmem:[%s2040_s9 + $0x20] sm:$0xff] %vm64_vm0, %v1215_v49 }
 0x4f3   :  { %v1217_v50 = vpop.f32.mrf.mxu1 }
 0x4f4   :  { %v1218_v51 = vadd.f32 %v1400_v40, %v1217_v50 }
 0x4f6   :  { %1231 = vst.msk [vmem:[%s2040_s9 + $0x28] sm:$0xff] %vm64_vm0, %v1218_v51 }
 0x4fb   :  { %v1220_v19 = vpop.f32.mrf.mxu1 }
 0x4fc   :  { %v1221_v43 = vadd.f32 %v1400_v40, %v1220_v19 }
 0x4fe   :  { %1232 = vst.msk [vmem:[%s2040_s9 + $0x30] sm:$0xff] %vm64_vm0, %v1221_v43 }
 0x508   :  { %v1223_v35 = vpop.f32.mrf.mxu1 }
 0x509   :  { %v1224_v54 = vadd.f32 %v1400_v40, %v1223_v35 }
 0x50b   :  { %1233 = vst.msk [vmem:[%s2040_s9 + $0x38] sm:$0xff] %vm64_vm0, %v1224_v54 }
 0x50c   :  { %1238 = vsyncpa [#allocation3], 1 }

</bundles_post_ra>
